<compile_context>
chip_gen: v7x
topology: tpu7x:2x2x1
jax: 0.10.0
libtpu: 0.0.40
codegen_flags: <defaults>
</compile_context>

<pallas_src>
import jax
import jax.numpy as jnp
from jax.experimental import pallas as pl
from jax.experimental.pallas import tpu as pltpu

LANE = 128  # pad tiny output dims up to one full lane width


# ----------------------------- Pallas kernel --------------------------------
def fused_mlp_kernel(x_ref,
                     w1_ref, b1_ref,
                     w2_ref, b2_ref,
                     w3_ref, b3_ref,
                     w4_ref, b4_ref,
                     o_ref):
    """relu(... relu(relu(x@W1+b1)@W2+b2) ... @W4+b4)  — all in VMEM."""
    h = x_ref[...]
    h = jnp.maximum(
        jnp.dot(h, w1_ref[...], preferred_element_type=jnp.float32) + b1_ref[...], 0.0)
    h = jnp.maximum(
        jnp.dot(h, w2_ref[...], preferred_element_type=jnp.float32) + b2_ref[...], 0.0)
    h = jnp.maximum(
        jnp.dot(h, w3_ref[...], preferred_element_type=jnp.float32) + b3_ref[...], 0.0)
    h = jnp.maximum(
        jnp.dot(h, w4_ref[...], preferred_element_type=jnp.float32) + b4_ref[...], 0.0)
    o_ref[...] = h.astype(o_ref.dtype)


def model_forward(x, folded_params, out_dim):
    """Single fused pallas_call over the whole network.

    folded_params: list of (W_folded (Cin, Cout_padded), b_folded (1, Cout_padded)).
    Returns (B, out_dim) after slicing off lane padding of the last layer.
    """
    B = x.shape[0]
    last_padded = folded_params[-1][0].shape[1]

    flat_inputs = [x]
    in_specs = [pl.BlockSpec(x.shape, lambda i: (0, 0))]
    for (w, b) in folded_params:
        flat_inputs += [w, b]
        in_specs += [
            pl.BlockSpec(w.shape, lambda i: (0, 0)),
            pl.BlockSpec(b.shape, lambda i: (0, 0)),
        ]

    out_padded = pl.pallas_call(
        fused_mlp_kernel,
        out_shape=jax.ShapeDtypeStruct((B, last_padded), jnp.float32),
        grid=(1,),
        in_specs=in_specs,
        out_specs=pl.BlockSpec((B, last_padded), lambda i: (0, 0)),
        compiler_params=pltpu.CompilerParams(
            dimension_semantics=("arbitrary",)),
    )(*flat_inputs)
    return out_padded[:, :out_dim]


# --------------------------- Parameter construction -------------------------
def init_linear(key, in_dim, out_dim):
    """PyTorch-style Linear init: U(-1/sqrt(in_dim), 1/sqrt(in_dim))."""
    kw, kb = jax.random.split(key)
    bound = 1.0 / jnp.sqrt(jnp.float32(in_dim))
    w = jax.random.uniform(kw, (in_dim, out_dim), jnp.float32, -bound, bound)
    b = jax.random.uniform(kb, (out_dim,), jnp.float32, -bound, bound)
    return w, b


def fresh_bn_stats(out_dim, eps=1e-5):
    """Freshly-initialised BatchNorm1d: gamma=1, beta=0, mean=0, var=1."""
    gamma = jnp.ones((out_dim,), jnp.float32)
    beta = jnp.zeros((out_dim,), jnp.float32)
    running_mean = jnp.zeros((out_dim,), jnp.float32)
    running_var = jnp.ones((out_dim,), jnp.float32)
    return gamma, beta, running_mean, running_var, eps


def fold_layer(w, b, bn, pad_to=None):
    """Fold eval-mode BN into (W, bias); optionally pad output channels."""
    gamma, beta, mean, var, eps = bn
    s = gamma / jnp.sqrt(var + eps)                    # (Cout,)
    w_f = w * s[None, :]                               # scale folded into W
    b_f = (b - mean) * s + beta                        # (Cout,)
    if pad_to is not None and pad_to > w_f.shape[1]:
        pad = pad_to - w_f.shape[1]
        w_f = jnp.pad(w_f, ((0, 0), (0, pad)))
        b_f = jnp.pad(b_f, ((0, pad),))
    return w_f, b_f.reshape(1, -1)


def build_params(key):
    dims = [(784, 512), (512, 256), (256, 128), (128, 10)]
    raw, folded = [], []
    for idx, (din, dout) in enumerate(dims):
        key, sub = jax.random.split(key)
        w, b = init_linear(sub, din, dout)
        bn = fresh_bn_stats(dout)
        raw.append((w, b, bn))
        pad_to = LANE if idx == len(dims) - 1 else None  # lane-dense last layer
        folded.append(fold_layer(w, b, bn, pad_to=pad_to))
    return raw, folded


# ------------------------------ JAX reference --------------------------------
def model_forward_ref(x, raw_params):
    h = x
    for (w, b, (gamma, beta, mean, var, eps)) in raw_params:
        y = jnp.dot(h, w) + b[None, :]
        y = (y - mean[None, :]) / jnp.sqrt(var[None, :] + eps)
        y = y * gamma[None, :] + beta[None, :]
        h = jnp.maximum(y, 0.0)  # Dropout is identity in eval mode
    return h


# ----------------------------------- Main ------------------------------------
if __name__ == "__main__":
    key = jax.random.PRNGKey(0)
    kx, kp = jax.random.split(key)

    B = 8  # small batch, multiple of 8 sublanes
    x = jax.random.normal(kx, (B, 784), dtype=jnp.float32)
    raw_params, folded_params = build_params(kp)

    out = model_forward(x, folded_params, out_dim=10)
    out = jax.block_until_ready(out)

    ref = model_forward_ref(x, raw_params)
    assert out.shape == (B, 10)
    assert jnp.allclose(out, ref, atol=1e-4, rtol=1e-4), "mismatch vs JAX reference"

    print("KERNEL_OK")
</pallas_src>

<mosaic_0001>
module attributes {stable_mosaic.version = 11 : i64} {
  func.func @fused_mlp_kernel(%arg0: i32, %arg1: memref<8x784xf32, #tpu.memory_space<vmem>>, %arg2: memref<784x512xf32, #tpu.memory_space<vmem>>, %arg3: memref<1x512xf32, #tpu.memory_space<vmem>>, %arg4: memref<512x256xf32, #tpu.memory_space<vmem>>, %arg5: memref<1x256xf32, #tpu.memory_space<vmem>>, %arg6: memref<256x128xf32, #tpu.memory_space<vmem>>, %arg7: memref<1x128xf32, #tpu.memory_space<vmem>>, %arg8: memref<128x128xf32, #tpu.memory_space<vmem>>, %arg9: memref<1x128xf32, #tpu.memory_space<vmem>>, %arg10: memref<8x128xf32, #tpu.memory_space<vmem>>) attributes {dimension_semantics = [#tpu.dimension_semantics<arbitrary>], iteration_bounds = array<i64: 1>, scalar_prefetch = 0 : i64, scratch_operands = 0 : i64, tpu.core_type = #tpu.core_type<tc>, window_params = [{pipeline_mode = #tpu.pipeline_mode<synchronous>, transform_indices = @transform_0, window_bounds = array<i64: 8, 784>}, {pipeline_mode = #tpu.pipeline_mode<synchronous>, transform_indices = @transform_1, window_bounds = array<i64: 784, 512>}, {pipeline_mode = #tpu.pipeline_mode<synchronous>, transform_indices = @transform_2, window_bounds = array<i64: 1, 512>}, {pipeline_mode = #tpu.pipeline_mode<synchronous>, transform_indices = @transform_3, window_bounds = array<i64: 512, 256>}, {pipeline_mode = #tpu.pipeline_mode<synchronous>, transform_indices = @transform_4, window_bounds = array<i64: 1, 256>}, {pipeline_mode = #tpu.pipeline_mode<synchronous>, transform_indices = @transform_5, window_bounds = array<i64: 256, 128>}, {pipeline_mode = #tpu.pipeline_mode<synchronous>, transform_indices = @transform_6, window_bounds = array<i64: 1, 128>}, {pipeline_mode = #tpu.pipeline_mode<synchronous>, transform_indices = @transform_7, window_bounds = array<i64: 128, 128>}, {pipeline_mode = #tpu.pipeline_mode<synchronous>, transform_indices = @transform_8, window_bounds = array<i64: 1, 128>}, {pipeline_mode = #tpu.pipeline_mode<synchronous>, transform_indices = @transform_9, window_bounds = array<i64: 8, 128>}]} {
    %c0 = arith.constant 0 : index
    %c0_0 = arith.constant 0 : index
    %0 = vector.load %arg1[%c0, %c0_0] : memref<8x784xf32, #tpu.memory_space<vmem>>, vector<8x784xf32>
    %c0_1 = arith.constant 0 : index
    %c0_2 = arith.constant 0 : index
    %1 = vector.load %arg2[%c0_1, %c0_2] : memref<784x512xf32, #tpu.memory_space<vmem>>, vector<784x512xf32>
    %cst = arith.constant dense<0.000000e+00> : vector<8x512xf32>
    %2 = tpu.matmul %0, %1, %cst {dimension_numbers = #tpu.dot_dimension_numbers<[1], [0], [0], [1], [0, 0, 1, 1], [], []>} : vector<8x784xf32>, vector<784x512xf32>, vector<8x512xf32> -> vector<8x512xf32>
    %c0_3 = arith.constant 0 : index
    %c0_4 = arith.constant 0 : index
    %3 = vector.load %arg3[%c0_3, %c0_4] : memref<1x512xf32, #tpu.memory_space<vmem>>, vector<1x512xf32>
    %4 = vector.broadcast %3 : vector<1x512xf32> to vector<8x512xf32>
    %5 = arith.addf %2, %4 : vector<8x512xf32>
    %cst_5 = arith.constant 0.000000e+00 : f32
    %6 = vector.broadcast %cst_5 : f32 to vector<8x512xf32>
    %7 = arith.maximumf %5, %6 : vector<8x512xf32>
    %c0_6 = arith.constant 0 : index
    %c0_7 = arith.constant 0 : index
    %8 = vector.load %arg4[%c0_6, %c0_7] : memref<512x256xf32, #tpu.memory_space<vmem>>, vector<512x256xf32>
    %cst_8 = arith.constant dense<0.000000e+00> : vector<8x256xf32>
    %9 = tpu.matmul %7, %8, %cst_8 {dimension_numbers = #tpu.dot_dimension_numbers<[1], [0], [0], [1], [0, 0, 1, 1], [], []>} : vector<8x512xf32>, vector<512x256xf32>, vector<8x256xf32> -> vector<8x256xf32>
    %c0_9 = arith.constant 0 : index
    %c0_10 = arith.constant 0 : index
    %10 = vector.load %arg5[%c0_9, %c0_10] : memref<1x256xf32, #tpu.memory_space<vmem>>, vector<1x256xf32>
    %11 = vector.broadcast %10 : vector<1x256xf32> to vector<8x256xf32>
    %12 = arith.addf %9, %11 : vector<8x256xf32>
    %cst_11 = arith.constant 0.000000e+00 : f32
    %13 = vector.broadcast %cst_11 : f32 to vector<8x256xf32>
    %14 = arith.maximumf %12, %13 : vector<8x256xf32>
    %c0_12 = arith.constant 0 : index
    %c0_13 = arith.constant 0 : index
    %15 = vector.load %arg6[%c0_12, %c0_13] : memref<256x128xf32, #tpu.memory_space<vmem>>, vector<256x128xf32>
    %cst_14 = arith.constant dense<0.000000e+00> : vector<8x128xf32>
    %16 = tpu.matmul %14, %15, %cst_14 {dimension_numbers = #tpu.dot_dimension_numbers<[1], [0], [0], [1], [0, 0, 1, 1], [], []>} : vector<8x256xf32>, vector<256x128xf32>, vector<8x128xf32> -> vector<8x128xf32>
    %c0_15 = arith.constant 0 : index
    %c0_16 = arith.constant 0 : index
    %17 = vector.load %arg7[%c0_15, %c0_16] : memref<1x128xf32, #tpu.memory_space<vmem>>, vector<1x128xf32>
    %18 = vector.broadcast %17 : vector<1x128xf32> to vector<8x128xf32>
    %19 = arith.addf %16, %18 : vector<8x128xf32>
    %cst_17 = arith.constant 0.000000e+00 : f32
    %20 = vector.broadcast %cst_17 : f32 to vector<8x128xf32>
    %21 = arith.maximumf %19, %20 : vector<8x128xf32>
    %c0_18 = arith.constant 0 : index
    %c0_19 = arith.constant 0 : index
    %22 = vector.load %arg8[%c0_18, %c0_19] : memref<128x128xf32, #tpu.memory_space<vmem>>, vector<128x128xf32>
    %cst_20 = arith.constant dense<0.000000e+00> : vector<8x128xf32>
    %23 = tpu.matmul %21, %22, %cst_20 {dimension_numbers = #tpu.dot_dimension_numbers<[1], [0], [0], [1], [0, 0, 1, 1], [], []>} : vector<8x128xf32>, vector<128x128xf32>, vector<8x128xf32> -> vector<8x128xf32>
    %c0_21 = arith.constant 0 : index
    %c0_22 = arith.constant 0 : index
    %24 = vector.load %arg9[%c0_21, %c0_22] : memref<1x128xf32, #tpu.memory_space<vmem>>, vector<1x128xf32>
    %25 = vector.broadcast %24 : vector<1x128xf32> to vector<8x128xf32>
    %26 = arith.addf %23, %25 : vector<8x128xf32>
    %cst_23 = arith.constant 0.000000e+00 : f32
    %27 = vector.broadcast %cst_23 : f32 to vector<8x128xf32>
    %28 = arith.maximumf %26, %27 : vector<8x128xf32>
    %c0_24 = arith.constant 0 : index
    %c0_25 = arith.constant 0 : index
    %29 = vector.load %arg10[%c0_24, %c0_25] : memref<8x128xf32, #tpu.memory_space<vmem>>, vector<8x128xf32>
    tpu.vector_store %arg10[%c0_24, %c0_25], %28 {strides = array<i32>} : memref<8x128xf32, #tpu.memory_space<vmem>>, vector<8x128xf32>,
    return
  }
  func.func @transform_0(%arg0: i32) -> (i32, i32) {
    %c0_i32 = arith.constant 0 : i32
    %c0_i32_0 = arith.constant 0 : i32
    %c0_i32_1 = arith.constant 0 : i32
    return %c0_i32, %c0_i32_0 : i32, i32
  }
  func.func @transform_1(%arg0: i32) -> (i32, i32) {
    %c0_i32 = arith.constant 0 : i32
    %c0_i32_0 = arith.constant 0 : i32
    %c0_i32_1 = arith.constant 0 : i32
    return %c0_i32, %c0_i32_0 : i32, i32
  }
  func.func @transform_2(%arg0: i32) -> (i32, i32) {
    %c0_i32 = arith.constant 0 : i32
    %c0_i32_0 = arith.constant 0 : i32
    %c0_i32_1 = arith.constant 0 : i32
    return %c0_i32, %c0_i32_0 : i32, i32
  }
  func.func @transform_3(%arg0: i32) -> (i32, i32) {
    %c0_i32 = arith.constant 0 : i32
    %c0_i32_0 = arith.constant 0 : i32
    %c0_i32_1 = arith.constant 0 : i32
    return %c0_i32, %c0_i32_0 : i32, i32
  }
  func.func @transform_4(%arg0: i32) -> (i32, i32) {
    %c0_i32 = arith.constant 0 : i32
    %c0_i32_0 = arith.constant 0 : i32
    %c0_i32_1 = arith.constant 0 : i32
    return %c0_i32, %c0_i32_0 : i32, i32
  }
  func.func @transform_5(%arg0: i32) -> (i32, i32) {
    %c0_i32 = arith.constant 0 : i32
    %c0_i32_0 = arith.constant 0 : i32
    %c0_i32_1 = arith.constant 0 : i32
    return %c0_i32, %c0_i32_0 : i32, i32
  }
  func.func @transform_6(%arg0: i32) -> (i32, i32) {
    %c0_i32 = arith.constant 0 : i32
    %c0_i32_0 = arith.constant 0 : i32
    %c0_i32_1 = arith.constant 0 : i32
    return %c0_i32, %c0_i32_0 : i32, i32
  }
  func.func @transform_7(%arg0: i32) -> (i32, i32) {
    %c0_i32 = arith.constant 0 : i32
    %c0_i32_0 = arith.constant 0 : i32
    %c0_i32_1 = arith.constant 0 : i32
    return %c0_i32, %c0_i32_0 : i32, i32
  }
  func.func @transform_8(%arg0: i32) -> (i32, i32) {
    %c0_i32 = arith.constant 0 : i32
    %c0_i32_0 = arith.constant 0 : i32
    %c0_i32_1 = arith.constant 0 : i32
    return %c0_i32, %c0_i32_0 : i32, i32
  }
  func.func @transform_9(%arg0: i32) -> (i32, i32) {
    %c0_i32 = arith.constant 0 : i32
    %c0_i32_0 = arith.constant 0 : i32
    %c0_i32_1 = arith.constant 0 : i32
    return %c0_i32, %c0_i32_0 : i32, i32
  }
}

</mosaic_0001>

<bundles_post_ra>
// kernel: tpu_custom_call.1
= control target key start
LH: loop header
LB: loop body
LE: loop exit
PB: predicated region body
PF: predicated region fallthrough
CT: control target
= control target key end

     0   :  { %14 = vsyncpa [#allocation3], 0  ;;  %s2812_s0 = inlined_call_operand.hbm [shape: f32[8,784], index: 0, kind: input, shape index: {}]   ;;  %s2813_s1 = inlined_call_operand.hbm [shape: f32[784,512], index: 1, kind: input, shape index: {}]   ;;  %s2814_s2 = inlined_call_operand.hbm [shape: f32[1,512], index: 2, kind: input, shape index: {}]   ;;  %s2815_s3 = inlined_call_operand.hbm [shape: f32[512,256], index: 3, kind: input, shape index: {}]   ;;  %s2816_s4 = inlined_call_operand.hbm [shape: f32[1,256], index: 4, kind: input, shape index: {}]   ;;  %s2817_s5 = inlined_call_operand.hbm [shape: f32[256,128], index: 5, kind: input, shape index: {}]   ;;  %s2818_s6 = inlined_call_operand.hbm [shape: f32[1,128], index: 6, kind: input, shape index: {}]   ;;  %s2819_s7 = inlined_call_operand.hbm [shape: f32[128,128], index: 7, kind: input, shape index: {}]   ;;  %s2820_s8 = inlined_call_operand.hbm [shape: f32[1,128], index: 8, kind: input, shape index: {}]   ;;  %s2821_s9 = inlined_call_operand.hbm [shape: f32[8,128], index: 9, kind: output, shape index: {}]  }
   0x1   :  { %15 = vsyncpa [#allocation6], 0 }
   0x2   :  { %16 = vsyncpa [#allocation9], 0 }
   0x3   :  { %17 = vsyncpa [#allocation12], 0 }
   0x4   :  { %18 = vsyncpa [#allocation15], 0 }
   0x5   :  { %19 = vsyncpa [#allocation4], 0  ;;  %s2589_s30 = smov [#allocation5]   ;;  %s2357_s13 = scalar_lea.hbm %s2813_s1, 50176 }
   0x6   :  { %s35_s10 = sshll.u32 %s2589_s30, 4  ;;  %p2358_p0 = scmp.ne.s32.totalorder %s2813_s1, %s2357_s13  ;;  %s36_s10 = int_to_ptr.vmem [resolvable:$true] %s35_s10 }
   0x7   :  { %p2361_p1 = scmp.lt.u32.totalorder %s2357_s13, %s2813_s1 }
   0x9   :  { %p2363_p2 = pnand %p2361_p1, %p2358_p0 }
   0xb   :  { %2366 = shalt.err (!%p2363_p2)
}
   0xc   :  { %s2367_s18 = scalar_lea.vmem %s36_s10, 50176  ;;  %p2372_p4 = scmp.lt.s32.totalorder %s36_s10, %s36_s10 }
   0xd   :  { %p2368_p3 = scmp.ne.s32.totalorder %s36_s10, %s2367_s18  ;;  %p2373_p5 = scmp.lt.s32.totalorder %s2367_s18, %s2367_s18 }
   0xf   :  { %p2374_p6 = por %p2373_p5, %p2372_p4 }
  0x11   :  { %p2375_p7 = pnand %p2374_p6, %p2368_p3 }
  0x13   :  { %2378 = shalt.err (!%p2375_p7)
}
  0x14   :  { %s2590_s19 = smov 512   ;;  %s2591_s20 = smov 32  }
  0x15   :  { %41 = dma.hbm_to_vmem [thread:$0]  %s2813_s1, 50176, %s36_s10, [#allocation6], %s2590_s19, %s2590_s19, %s2591_s20  }
  0x16   :  { %s2592_s23 = smov [#allocation8]   ;;  %s2379_s27 = scalar_lea.hbm %s2815_s3, 16384 }
  0x17   :  { %s57_s24 = sshll.u32 %s2592_s23, 4  ;;  %p2380_p8 = scmp.ne.s32.totalorder %s2815_s3, %s2379_s27  ;;  %s58_s24 = int_to_ptr.vmem [resolvable:$true] %s57_s24 }
  0x18   :  { %p2383_p9 = scmp.lt.u32.totalorder %s2379_s27, %s2815_s3 }
  0x1a   :  { %p2385_p10 = pnand %p2383_p9, %p2380_p8 }
  0x1c   :  { %2388 = shalt.err (!%p2385_p10)
}
  0x1d   :  { %s2389_s12 = scalar_lea.vmem %s58_s24, 16384  ;;  %p2394_p12 = scmp.lt.s32.totalorder %s58_s24, %s58_s24 }
  0x1e   :  { %p2390_p11 = scmp.ne.s32.totalorder %s58_s24, %s2389_s12  ;;  %p2395_p13 = scmp.lt.s32.totalorder %s2389_s12, %s2389_s12 }
  0x20   :  { %p2396_p0 = por %p2395_p13, %p2394_p12 }
  0x22   :  { %p2397_p1 = pnand %p2396_p0, %p2390_p11 }
  0x24   :  { %2400 = shalt.err (!%p2397_p1)
}
  0x25   :  { %s2593_s1 = smov 256   ;;  %s2594_s10 = smov 16  }
  0x26   :  { %63 = dma.hbm_to_vmem [thread:$0]  %s2815_s3, 16384, %s58_s24, [#allocation9], %s2593_s1, %s2593_s1, %s2594_s10  }
  0x27   :  { %s2595_s15 = smov [#allocation11]   ;;  %s2401_s19 = scalar_lea.hbm %s2817_s5, 4096 }
  0x28   :  { %s79_s16 = sshll.u32 %s2595_s15, 4  ;;  %p2402_p2 = scmp.ne.s32.totalorder %s2817_s5, %s2401_s19  ;;  %s80_s16 = int_to_ptr.vmem [resolvable:$true] %s79_s16 }
  0x29   :  { %p2405_p3 = scmp.lt.u32.totalorder %s2401_s19, %s2817_s5 }
  0x2b   :  { %p2407_p4 = pnand %p2405_p3, %p2402_p2 }
  0x2d   :  { %2410 = shalt.err (!%p2407_p4)
}
  0x2e   :  { %s2411_s25 = scalar_lea.vmem %s80_s16, 4096  ;;  %p2416_p6 = scmp.lt.s32.totalorder %s80_s16, %s80_s16 }
  0x2f   :  { %p2412_p5 = scmp.ne.s32.totalorder %s80_s16, %s2411_s25  ;;  %p2417_p7 = scmp.lt.s32.totalorder %s2411_s25, %s2411_s25 }
  0x31   :  { %p2418_p8 = por %p2417_p7, %p2416_p6 }
  0x33   :  { %p2419_p9 = pnand %p2418_p8, %p2412_p5 }
  0x35   :  { %2422 = shalt.err (!%p2419_p9)
}
  0x36   :  { %s2596_s3 = smov 128   ;;  %s2597_s24 = smov 8  }
  0x37   :  { %85 = dma.hbm_to_vmem [thread:$0]  %s2817_s5, 4096, %s80_s16, [#allocation12], %s2596_s3, %s2596_s3, %s2597_s24  }
  0x38   :  { %s2598_s28 = smov [#allocation14]   ;;  %s2599_s30 = smov [#allocation2]  }
  0x39   :  { %s101_s29 = sshll.u32 %s2598_s28, 4  ;;  %s26_s11 = sshll.u32 %s2599_s30, 4  ;;  %s102_s29 = int_to_ptr.vmem [resolvable:$true] %s101_s29  ;;  %s27_s11 = int_to_ptr.vmem [resolvable:$true] %s26_s11 }
  0x3a   :  { %s2423_s10 = scalar_lea.hbm %s2819_s7, 2048 }
  0x3b   :  { %p2424_p10 = scmp.ne.s32.totalorder %s2819_s7, %s2423_s10  ;;  %p2427_p11 = scmp.lt.u32.totalorder %s2423_s10, %s2819_s7 }
  0x3d   :  { %p2429_p12 = pnand %p2427_p11, %p2424_p10 }
  0x3f   :  { %2432 = shalt.err (!%p2429_p12)
}
  0x40   :  { %s2433_s5 = scalar_lea.vmem %s102_s29, 2048  ;;  %p2438_p0 = scmp.lt.s32.totalorder %s102_s29, %s102_s29 }
  0x41   :  { %p2434_p13 = scmp.ne.s32.totalorder %s102_s29, %s2433_s5  ;;  %p2439_p1 = scmp.lt.s32.totalorder %s2433_s5, %s2433_s5 }
  0x43   :  { %p2440_p2 = por %p2439_p1, %p2438_p0 }
  0x45   :  { %p2441_p3 = pnand %p2440_p2, %p2434_p13 }
  0x47   :  { %2444 = shalt.err (!%p2441_p3)
}
  0x48   :  { %107 = dma.hbm_to_vmem [thread:$0]  %s2819_s7, 2048, %s102_s29, [#allocation15], %s2596_s3, %s2596_s3, %s2597_s24  }
  0x49   :  { %s2445_s21 = scalar_lea.hbm %s2812_s0, 896 }
  0x4a   :  { %p2446_p4 = scmp.ne.s32.totalorder %s2812_s0, %s2445_s21  ;;  %p2449_p5 = scmp.lt.u32.totalorder %s2445_s21, %s2812_s0 }
  0x4c   :  { %p2451_p6 = pnand %p2449_p5, %p2446_p4 }
  0x4e   :  { %2454 = shalt.err (!%p2451_p6)
}
  0x4f   :  { %s2455_s27 = scalar_lea.vmem %s27_s11, 896  ;;  %p2460_p8 = scmp.lt.s32.totalorder %s27_s11, %s27_s11 }
  0x50   :  { %p2456_p7 = scmp.ne.s32.totalorder %s27_s11, %s2455_s27  ;;  %p2461_p9 = scmp.lt.s32.totalorder %s2455_s27, %s2455_s27 }
  0x52   :  { %p2462_p10 = por %p2461_p9, %p2460_p8 }
  0x54   :  { %p2463_p11 = pnand %p2462_p10, %p2456_p7 }
  0x56   :  { %2466 = shalt.err (!%p2463_p11)
}
  0x57   :  { %29 = dma.hbm_to_vmem [thread:$0]  %s2812_s0, 896, %s27_s11, [#allocation3]  }
  0x58   :  { %s2600_s24 = smov [#allocation7]   ;;  %s2601_s29 = smov [#allocation10]  }
  0x59   :  { %s48_s28 = sshll.u32 %s2600_s24, 4  ;;  %s70_s30 = sshll.u32 %s2601_s29, 4  ;;  %s49_s28 = int_to_ptr.vmem [resolvable:$true] %s48_s28  ;;  %s71_s30 = int_to_ptr.vmem [resolvable:$true] %s70_s30 }
  0x5a   :  { %s2467_s10 = scalar_lea.hbm %s2814_s2, 64 }
  0x5b   :  { %p2468_p12 = scmp.ne.s32.totalorder %s2814_s2, %s2467_s10  ;;  %p2471_p13 = scmp.lt.u32.totalorder %s2467_s10, %s2814_s2 }
  0x5d   :  { %p2473_p0 = pnand %p2471_p13, %p2468_p12 }
  0x5f   :  { %2476 = shalt.err (!%p2473_p0)
}
  0x60   :  { %s2477_s0 = scalar_lea.vmem %s49_s28, 64  ;;  %p2482_p2 = scmp.lt.s32.totalorder %s49_s28, %s49_s28 }
  0x61   :  { %p2478_p1 = scmp.ne.s32.totalorder %s49_s28, %s2477_s0  ;;  %p2483_p3 = scmp.lt.s32.totalorder %s2477_s0, %s2477_s0 }
  0x63   :  { %p2484_p4 = por %p2483_p3, %p2482_p2 }
  0x65   :  { %p2485_p5 = pnand %p2484_p4, %p2478_p1 }
  0x67   :  { %2488 = shalt.err (!%p2485_p5)
}
  0x68   :  { %51 = dma.hbm_to_vmem [thread:$0]  %s2814_s2, 64, %s49_s28, [#allocation6]  }
  0x69   :  { %s2489_s19 = scalar_lea.hbm %s2816_s4, 32 }
  0x6a   :  { %p2490_p6 = scmp.ne.s32.totalorder %s2816_s4, %s2489_s19  ;;  %p2493_p7 = scmp.lt.u32.totalorder %s2489_s19, %s2816_s4 }
  0x6c   :  { %p2495_p8 = pnand %p2493_p7, %p2490_p6 }
  0x6e   :  { %2498 = shalt.err (!%p2495_p8)
}
  0x6f   :  { %s2499_s25 = scalar_lea.vmem %s71_s30, 32  ;;  %p2504_p10 = scmp.lt.s32.totalorder %s71_s30, %s71_s30 }
  0x70   :  { %p2500_p9 = scmp.ne.s32.totalorder %s71_s30, %s2499_s25  ;;  %p2505_p11 = scmp.lt.s32.totalorder %s2499_s25, %s2499_s25 }
  0x72   :  { %p2506_p12 = por %p2505_p11, %p2504_p10 }
  0x74   :  { %p2507_p13 = pnand %p2506_p12, %p2500_p9 }
  0x76   :  { %2510 = shalt.err (!%p2507_p13)
}
  0x77   :  { %73 = dma.hbm_to_vmem [thread:$0]  %s2816_s4, 32, %s71_s30, [#allocation9]  }
  0x78   :  { %s2602_s27 = smov [#allocation13]   ;;  %s2603_s3 = smov [#allocation16]  }
  0x79   :  { %s92_s7 = sshll.u32 %s2602_s27, 4  ;;  %s114_s24 = sshll.u32 %s2603_s3, 4  ;;  %s93_s7 = int_to_ptr.vmem [resolvable:$true] %s92_s7  ;;  %s115_s24 = int_to_ptr.vmem [resolvable:$true] %s114_s24 }
  0x7a   :  { %s2511_s12 = scalar_lea.hbm %s2818_s6, 16 }
  0x7b   :  { %p2512_p0 = scmp.ne.s32.totalorder %s2818_s6, %s2511_s12  ;;  %p2515_p1 = scmp.lt.u32.totalorder %s2511_s12, %s2818_s6 }
  0x7d   :  { %p2517_p2 = pnand %p2515_p1, %p2512_p0 }
  0x7f   :  { %2520 = shalt.err (!%p2517_p2)
}
  0x80   :  { %s2521_s4 = scalar_lea.vmem %s93_s7, 16  ;;  %s2525_s30 = scalar_lea.vmem %s93_s7, 32 }
  0x81   :  { %p2522_p3 = scmp.ne.s32.totalorder %s93_s7, %s2521_s4  ;;  %p2526_p4 = scmp.lt.s32.totalorder %s93_s7, %s93_s7 }
  0x82   :  { %p2527_p5 = scmp.lt.s32.totalorder %s2525_s30, %s2521_s4 }
  0x84   :  { %p2528_p6 = por %p2527_p5, %p2526_p4 }
  0x86   :  { %p2529_p7 = pnand %p2528_p6, %p2522_p3 }
  0x88   :  { %2532 = shalt.err (!%p2529_p7)
}
  0x89   :  { %95 = dma.hbm_to_vmem [thread:$0]  %s2818_s6, 16, %s93_s7, [#allocation12]  }
  0x8a   :  { %s2533_s5 = scalar_lea.hbm %s2820_s8, 16 }
  0x8b   :  { %p2534_p8 = scmp.ne.s32.totalorder %s2820_s8, %s2533_s5  ;;  %p2537_p9 = scmp.lt.u32.totalorder %s2533_s5, %s2820_s8 }
  0x8d   :  { %p2539_p10 = pnand %p2537_p9, %p2534_p8 }
  0x8f   :  { %2542 = shalt.err (!%p2539_p10)
}
  0x90   :  { %s2543_s21 = scalar_lea.vmem %s115_s24, 16  ;;  %s2547_s22 = scalar_lea.vmem %s115_s24, 32 }
  0x91   :  { %p2544_p11 = scmp.ne.s32.totalorder %s115_s24, %s2543_s21  ;;  %p2548_p12 = scmp.lt.s32.totalorder %s115_s24, %s115_s24 }
  0x92   :  { %p2549_p13 = scmp.lt.s32.totalorder %s2547_s22, %s2543_s21 }
  0x94   :  { %p2550_p0 = por %p2549_p13, %p2548_p12 }
  0x96   :  { %p2551_p1 = pnand %p2550_p0, %p2544_p11 }
  0x98   :  { %2554 = shalt.err (!%p2551_p1)
}
  0x99   :  { %117 = dma.hbm_to_vmem [thread:$0]  %s2820_s8, 16, %s115_s24, [#allocation15]  }
  0x9a   :  { %2577 = dma.done.wait [#allocation3], 896  }
  0x9b   :  { %2578 = vsyncadd [#allocation3], 4294966400 }
  0x9c   :  { %2579 = dma.done.wait [#allocation6], 50240  }
  0x9d   :  { %2580 = vsyncadd [#allocation6], 4294917056 }
  0x9e   :  { %2581 = dma.done.wait [#allocation9], 16416  }
  0x9f   :  { %2582 = vsyncadd [#allocation9], 4294950880 }
  0xa0   :  { %2583 = dma.done.wait [#allocation12], 4112  }
  0xa1   :  { %2584 = vsyncadd [#allocation12], 4294963184 }
  0xa2   :  { %2585 = dma.done.wait [#allocation15], 2064  }
  0xa3   :  { %2586 = vsyncadd [#allocation15], 4294965232  ;;  %v2604_v0 = vmov 0.0   ;;  %v153_v1 = vld [vmem:[#allocation5 + $0x8] sm:$0xff]  ;;  %v152_v6 = vld [vmem:[#allocation5] sm:$0xff]  ;;  %vm566_vm0 = vcmask 130048  }
  0xa4   :  { %847 = vmatprep.mubr.f32.mxu1 %v2604_v0  ;;  %v157_v2 = vld [vmem:[#allocation5 + $0x28] sm:$0xff]  ;;  %v156_v7 = vld [vmem:[#allocation5 + $0x20] sm:$0xff]  ;;  %v155_v15 = vld [vmem:[#allocation5 + $0x18] sm:$0xff]  ;;  %vm2606_vm1 = vmmov 0   ;;  %s2607_s8 = smov [#allocation17]  }
  0xa5   :  { %v537_v3 = vld [vmem:[#allocation5 + $0xc08] sm:$0xff]  ;;  %v1741_v4 = vpack.c.bf16 %v157_v2, %v153_v1  ;;  %v1743_v9 = vpack.c.bf16 %v156_v7, %v152_v6  ;;  %v536_v10 = vld [vmem:[#allocation5 + $0xc00] sm:$0xff]  ;;  %v159_v16 = vld [vmem:[#allocation5 + $0x38] sm:$0xff]  ;;  %s1637_s25 = sshll.u32 %s2607_s8, 4  ;;  %s1638_s25 = int_to_ptr.vmem [resolvable:$true] %s1637_s25 }
  0xa6   :  { %v541_v5 = vld [vmem:[#allocation5 + $0xc28] sm:$0xff]  ;;  %v540_v11 = vld [vmem:[#allocation5 + $0xc20] sm:$0xff]  ;;  %v1937_v18 = vpack.c.bf16 %v159_v16, %v155_v15  ;;  %v151_v21 = vld [vmem:[#allocation2 + $0x30] sm:$0xff]  ;;  %s2555_s2 = scalar_lea.vmem %s1638_s25, 128  ;;  %p2560_p3 = scmp.lt.s32.totalorder %s1638_s25, %s1638_s25 }
  0xa7   :  { %v1933_v8 = vpack.c.bf16 %v541_v5, %v537_v3  ;;  %v161_v12 = vld [vmem:[#allocation5 + $0x48] sm:$0xff]  ;;  %1742 = vmatprep.subr.bf16.mxu0 %v1741_v4  ;;  %v1935_v13 = vpack.c.bf16 %v540_v11, %v536_v10  ;;  %v160_v19 = vld [vmem:[#allocation5 + $0x40] sm:$0xff]  ;;  %v154_v23 = vld [vmem:[#allocation5 + $0x10] sm:$0xff]  ;;  %p2556_p2 = scmp.ne.s32.totalorder %s1638_s25, %s2555_s2  ;;  %p2561_p4 = scmp.lt.s32.totalorder %s2555_s2, %s2555_s2 }
  0xa8   :  { %v165_v14 = vld [vmem:[#allocation5 + $0x68] sm:$0xff]  ;;  %1744 = vmatpush1.bf16.msra.mxu0 %v1743_v9  ;;  %v164_v20 = vld [vmem:[#allocation5 + $0x60] sm:$0xff]  ;;  %v158_v24 = vld [vmem:[#allocation5 + $0x30] sm:$0xff] }
  0xa9   :  { %1934 = vmatprep.subr.bf16.mxu1 %v1933_v8  ;;  %v1745_v17 = vpack.c.bf16 %v165_v14, %v161_v12  ;;  %v1747_v22 = vpack.c.bf16 %v164_v20, %v160_v19  ;;  %v169_v25 = vld [vmem:[#allocation5 + $0x88] sm:$0xff]  ;;  %v1939_v26 = vpack.c.bf16 %v158_v24, %v154_v23  ;;  %v163_v28 = vld [vmem:[#allocation5 + $0x58] sm:$0xff]  ;;  %v168_v32 = vld [vmem:[#allocation5 + $0x80] sm:$0xff]  ;;  %p2562_p5 = por %p2561_p4, %p2560_p3 }
  0xaa   :  { %1936 = vmatpush1.bf16.msra.mxu1 %v1935_v13  ;;  %v173_v27 = vld [vmem:[#allocation5 + $0xa8] sm:$0xff]  ;;  %v167_v29 = vld [vmem:[#allocation5 + $0x78] sm:$0xff]  ;;  %v172_v33 = vld [vmem:[#allocation5 + $0xa0] sm:$0xff] }
  0xab   :  { %1746 = vmatprep.subr.bf16.mxu0 %v1745_v17  ;;  %1938 = vmatprep.subr.bf16.mxu1 %v1937_v18  ;;  %v1749_v30 = vpack.c.bf16 %v173_v27, %v169_v25  ;;  %v1941_v31 = vpack.c.bf16 %v167_v29, %v163_v28  ;;  %v162_v34 = vld [vmem:[#allocation5 + $0x50] sm:$0xff]  ;;  %v1751_v35 = vpack.c.bf16 %v172_v33, %v168_v32  ;;  %v177_v37 = vld [vmem:[#allocation5 + $0xc8] sm:$0xff]  ;;  %v171_v41 = vld [vmem:[#allocation5 + $0x98] sm:$0xff]  ;;  %p2563_p6 = pnand %p2562_p5, %p2556_p2 }
  0xac   :  { %1748 = vmatpush1.bf16.msra.mxu0 %v1747_v22  ;;  %v166_v36 = vld [vmem:[#allocation5 + $0x70] sm:$0xff]  ;;  %v181_v38 = vld [vmem:[#allocation5 + $0xe8] sm:$0xff]  ;;  %v175_v42 = vld [vmem:[#allocation5 + $0xb8] sm:$0xff] }
  0xad   :  { %1650 = vmatmul.mubr.msk.f32.vlgmr.msra.gmra.mrb[0].mxu1 %vm566_vm0, %v151_v21  ;;  %1750 = vmatprep.subr.bf16.mxu0 %v1749_v30  ;;  %v1943_v39 = vpack.c.bf16 %v166_v36, %v162_v34  ;;  %v1753_v40 = vpack.c.bf16 %v181_v38, %v177_v37  ;;  %v176_v43 = vld [vmem:[#allocation5 + $0xc0] sm:$0xff]  ;;  %v1945_v44 = vpack.c.bf16 %v175_v42, %v171_v41  ;;  %v170_v46 = vld [vmem:[#allocation5 + $0x90] sm:$0xff]  ;;  %v185_v48 = vld [vmem:[#allocation5 + $0x108] sm:$0xff] }
  0xae   :  { %1940 = vmatpush1.bf16.msra.mxu1 %v1939_v26  ;;  %v180_v45 = vld [vmem:[#allocation5 + $0xe0] sm:$0xff]  ;;  %v174_v47 = vld [vmem:[#allocation5 + $0xb0] sm:$0xff]  ;;  %v189_v49 = vld [vmem:[#allocation5 + $0x128] sm:$0xff] }
  0xaf   :  { %1942 = vmatprep.subr.bf16.mxu1 %v1941_v31  ;;  %v179_v50 = vld [vmem:[#allocation5 + $0xd8] sm:$0xff]  ;;  %v1755_v51 = vpack.c.bf16 %v180_v45, %v176_v43  ;;  %v1947_v53 = vpack.c.bf16 %v174_v47, %v170_v46  ;;  %v1757_v54 = vpack.c.bf16 %v189_v49, %v185_v48  ;;  %v184_v55 = vld [vmem:[#allocation5 + $0x100] sm:$0xff]  ;;  %v178_v57 = vld [vmem:[#allocation5 + $0xd0] sm:$0xff] }
  0xb0   :  { %1752 = vmatpush1.bf16.msra.mxu0 %v1751_v35  ;;  %v183_v52 = vld [vmem:[#allocation5 + $0xf8] sm:$0xff]  ;;  %v188_v56 = vld [vmem:[#allocation5 + $0x120] sm:$0xff]  ;;  %v182_v59 = vld [vmem:[#allocation5 + $0xf0] sm:$0xff] }
  0xb1   :  { %1754 = vmatprep.subr.bf16.mxu0 %v1753_v40  ;;  %v1949_v58 = vpack.c.bf16 %v183_v52, %v179_v50  ;;  %v193_v60 = vld [vmem:[#allocation5 + $0x148] sm:$0xff]  ;;  %v187_v62 = vld [vmem:[#allocation5 + $0x118] sm:$0xff]  ;;  %v1759_v1 = vpack.c.bf16 %v188_v56, %v184_v55  ;;  %v1951_v2 = vpack.c.bf16 %v182_v59, %v178_v57  ;;  %v192_v4 = vld [vmem:[#allocation5 + $0x140] sm:$0xff] }
  0xb2   :  { %1944 = vmatpush1.bf16.msra.mxu1 %v1943_v39  ;;  %v197_v61 = vld [vmem:[#allocation5 + $0x168] sm:$0xff]  ;;  %v191_v63 = vld [vmem:[#allocation5 + $0x138] sm:$0xff]  ;;  %v196_v5 = vld [vmem:[#allocation5 + $0x160] sm:$0xff] }
  0xb3   :  { %1946 = vmatprep.subr.bf16.mxu1 %v1945_v44  ;;  %v1761_v3 = vpack.c.bf16 %v197_v61, %v193_v60  ;;  %v186_v6 = vld [vmem:[#allocation5 + $0x110] sm:$0xff]  ;;  %v1953_v7 = vpack.c.bf16 %v191_v63, %v187_v62  ;;  %v201_v9 = vld [vmem:[#allocation5 + $0x188] sm:$0xff]  ;;  %v195_v11 = vld [vmem:[#allocation5 + $0x158] sm:$0xff]  ;;  %v1763_v13 = vpack.c.bf16 %v196_v5, %v192_v4 }
  0xb4   :  { %1756 = vmatpush1.bf16.msra.mxu0 %v1755_v51  ;;  %v190_v8 = vld [vmem:[#allocation5 + $0x130] sm:$0xff]  ;;  %v205_v10 = vld [vmem:[#allocation5 + $0x1a8] sm:$0xff]  ;;  %v199_v12 = vld [vmem:[#allocation5 + $0x178] sm:$0xff] }
  0xb5   :  { %1758 = vmatprep.subr.bf16.mxu0 %v1757_v54  ;;  %v1955_v14 = vpack.c.bf16 %v190_v8, %v186_v6  ;;  %v1765_v15 = vpack.c.bf16 %v205_v10, %v201_v9  ;;  %v200_v16 = vld [vmem:[#allocation5 + $0x180] sm:$0xff]  ;;  %v194_v18 = vld [vmem:[#allocation5 + $0x150] sm:$0xff]  ;;  %v1957_v19 = vpack.c.bf16 %v199_v12, %v195_v11  ;;  %v209_v21 = vld [vmem:[#allocation5 + $0x1c8] sm:$0xff] }
  0xb6   :  { %1948 = vmatpush1.bf16.msra.mxu1 %v1947_v53  ;;  %v204_v17 = vld [vmem:[#allocation5 + $0x1a0] sm:$0xff]  ;;  %v198_v20 = vld [vmem:[#allocation5 + $0x170] sm:$0xff]  ;;  %v213_v22 = vld [vmem:[#allocation5 + $0x1e8] sm:$0xff] }
  0xb7   :  { %1950 = vmatprep.subr.bf16.mxu1 %v1949_v58  ;;  %v203_v23 = vld [vmem:[#allocation5 + $0x198] sm:$0xff]  ;;  %v1767_v25 = vpack.c.bf16 %v204_v17, %v200_v16  ;;  %v1959_v26 = vpack.c.bf16 %v198_v20, %v194_v18  ;;  %v1769_v27 = vpack.c.bf16 %v213_v22, %v209_v21  ;;  %v208_v28 = vld [vmem:[#allocation5 + $0x1c0] sm:$0xff]  ;;  %v202_v30 = vld [vmem:[#allocation5 + $0x190] sm:$0xff] }
  0xb8   :  { %1760 = vmatpush1.bf16.msra.mxu0 %v1759_v1  ;;  %v207_v24 = vld [vmem:[#allocation5 + $0x1b8] sm:$0xff]  ;;  %v212_v29 = vld [vmem:[#allocation5 + $0x1e0] sm:$0xff]  ;;  %v206_v32 = vld [vmem:[#allocation5 + $0x1b0] sm:$0xff] }
  0xb9   :  { %1762 = vmatprep.subr.bf16.mxu0 %v1761_v3  ;;  %v1961_v31 = vpack.c.bf16 %v207_v24, %v203_v23  ;;  %v217_v33 = vld [vmem:[#allocation5 + $0x208] sm:$0xff]  ;;  %v211_v35 = vld [vmem:[#allocation5 + $0x1d8] sm:$0xff]  ;;  %v1771_v37 = vpack.c.bf16 %v212_v29, %v208_v28  ;;  %v1963_v38 = vpack.c.bf16 %v206_v32, %v202_v30  ;;  %v216_v40 = vld [vmem:[#allocation5 + $0x200] sm:$0xff] }
  0xba   :  { %1952 = vmatpush1.bf16.msra.mxu1 %v1951_v2  ;;  %v221_v34 = vld [vmem:[#allocation5 + $0x228] sm:$0xff]  ;;  %v215_v36 = vld [vmem:[#allocation5 + $0x1f8] sm:$0xff]  ;;  %v220_v41 = vld [vmem:[#allocation5 + $0x220] sm:$0xff] }
  0xbb   :  { %1954 = vmatprep.subr.bf16.mxu1 %v1953_v7  ;;  %v1773_v39 = vpack.c.bf16 %v221_v34, %v217_v33  ;;  %v210_v42 = vld [vmem:[#allocation5 + $0x1d0] sm:$0xff]  ;;  %v1965_v43 = vpack.c.bf16 %v215_v36, %v211_v35  ;;  %v225_v45 = vld [vmem:[#allocation5 + $0x248] sm:$0xff]  ;;  %v219_v47 = vld [vmem:[#allocation5 + $0x218] sm:$0xff]  ;;  %v1775_v49 = vpack.c.bf16 %v220_v41, %v216_v40 }
  0xbc   :  { %1764 = vmatpush1.bf16.msra.mxu0 %v1763_v13  ;;  %v214_v44 = vld [vmem:[#allocation5 + $0x1f0] sm:$0xff]  ;;  %v229_v46 = vld [vmem:[#allocation5 + $0x268] sm:$0xff]  ;;  %v223_v48 = vld [vmem:[#allocation5 + $0x238] sm:$0xff] }
  0xbd   :  { %1766 = vmatprep.subr.bf16.mxu0 %v1765_v15  ;;  %v1967_v50 = vpack.c.bf16 %v214_v44, %v210_v42  ;;  %v1777_v51 = vpack.c.bf16 %v229_v46, %v225_v45  ;;  %v224_v52 = vld [vmem:[#allocation5 + $0x240] sm:$0xff]  ;;  %v218_v54 = vld [vmem:[#allocation5 + $0x210] sm:$0xff]  ;;  %v1969_v55 = vpack.c.bf16 %v223_v48, %v219_v47  ;;  %v233_v57 = vld [vmem:[#allocation5 + $0x288] sm:$0xff] }
  0xbe   :  { %1956 = vmatpush1.bf16.msra.mxu1 %v1955_v14  ;;  %v228_v53 = vld [vmem:[#allocation5 + $0x260] sm:$0xff]  ;;  %v222_v56 = vld [vmem:[#allocation5 + $0x230] sm:$0xff]  ;;  %v237_v58 = vld [vmem:[#allocation5 + $0x2a8] sm:$0xff] }
  0xbf   :  { %1958 = vmatprep.subr.bf16.mxu1 %v1957_v19  ;;  %v227_v59 = vld [vmem:[#allocation5 + $0x258] sm:$0xff]  ;;  %v1779_v61 = vpack.c.bf16 %v228_v53, %v224_v52  ;;  %v1971_v62 = vpack.c.bf16 %v222_v56, %v218_v54  ;;  %v1781_v63 = vpack.c.bf16 %v237_v58, %v233_v57  ;;  %v232_v1 = vld [vmem:[#allocation5 + $0x280] sm:$0xff]  ;;  %v226_v3 = vld [vmem:[#allocation5 + $0x250] sm:$0xff] }
  0xc0   :  { %1768 = vmatpush1.bf16.msra.mxu0 %v1767_v25  ;;  %v231_v60 = vld [vmem:[#allocation5 + $0x278] sm:$0xff]  ;;  %v236_v2 = vld [vmem:[#allocation5 + $0x2a0] sm:$0xff]  ;;  %v230_v5 = vld [vmem:[#allocation5 + $0x270] sm:$0xff] }
  0xc1   :  { %1770 = vmatprep.subr.bf16.mxu0 %v1769_v27  ;;  %v1973_v4 = vpack.c.bf16 %v231_v60, %v227_v59  ;;  %v241_v6 = vld [vmem:[#allocation5 + $0x2c8] sm:$0xff]  ;;  %v235_v8 = vld [vmem:[#allocation5 + $0x298] sm:$0xff]  ;;  %v1783_v10 = vpack.c.bf16 %v236_v2, %v232_v1  ;;  %v1975_v11 = vpack.c.bf16 %v230_v5, %v226_v3  ;;  %v240_v13 = vld [vmem:[#allocation5 + $0x2c0] sm:$0xff] }
  0xc2   :  { %1960 = vmatpush1.bf16.msra.mxu1 %v1959_v26  ;;  %v245_v7 = vld [vmem:[#allocation5 + $0x2e8] sm:$0xff]  ;;  %v239_v9 = vld [vmem:[#allocation5 + $0x2b8] sm:$0xff]  ;;  %v244_v14 = vld [vmem:[#allocation5 + $0x2e0] sm:$0xff] }
  0xc3   :  { %1962 = vmatprep.subr.bf16.mxu1 %v1961_v31  ;;  %v1785_v12 = vpack.c.bf16 %v245_v7, %v241_v6  ;;  %v234_v15 = vld [vmem:[#allocation5 + $0x290] sm:$0xff]  ;;  %v1977_v16 = vpack.c.bf16 %v239_v9, %v235_v8  ;;  %v249_v18 = vld [vmem:[#allocation5 + $0x308] sm:$0xff]  ;;  %v243_v20 = vld [vmem:[#allocation5 + $0x2d8] sm:$0xff]  ;;  %v1787_v23 = vpack.c.bf16 %v244_v14, %v240_v13 }
  0xc4   :  { %1772 = vmatpush1.bf16.msra.mxu0 %v1771_v37  ;;  %v238_v17 = vld [vmem:[#allocation5 + $0x2b0] sm:$0xff]  ;;  %v253_v19 = vld [vmem:[#allocation5 + $0x328] sm:$0xff]  ;;  %v247_v21 = vld [vmem:[#allocation5 + $0x2f8] sm:$0xff] }
  0xc5   :  { %1774 = vmatprep.subr.bf16.mxu0 %v1773_v39  ;;  %v146_v22 = vld [vmem:[#allocation2 + $0x8] sm:$0xff]  ;;  %v1979_v24 = vpack.c.bf16 %v238_v17, %v234_v15  ;;  %v1789_v25 = vpack.c.bf16 %v253_v19, %v249_v18  ;;  %v248_v26 = vld [vmem:[#allocation5 + $0x300] sm:$0xff]  ;;  %v1981_v29 = vpack.c.bf16 %v247_v21, %v243_v20  ;;  %v257_v31 = vld [vmem:[#allocation5 + $0x348] sm:$0xff] }
  0xc6   :  { %1964 = vmatpush1.bf16.msra.mxu1 %v1963_v38  ;;  %634 = vmatprep.mubr.f32.mxu0 %v146_v22  ;;  %v252_v27 = vld [vmem:[#allocation5 + $0x320] sm:$0xff]  ;;  %v242_v28 = vld [vmem:[#allocation5 + $0x2d0] sm:$0xff]  ;;  %v261_v32 = vld [vmem:[#allocation5 + $0x368] sm:$0xff] }
  0xc7   :  { %1966 = vmatprep.subr.bf16.mxu1 %v1965_v43  ;;  %v246_v30 = vld [vmem:[#allocation5 + $0x2f0] sm:$0xff]  ;;  %918 = vmatprep.mubr.f32.mxu1 %v146_v22  ;;  %v251_v33 = vld [vmem:[#allocation5 + $0x318] sm:$0xff]  ;;  %v1791_v35 = vpack.c.bf16 %v252_v27, %v248_v26  ;;  %v1793_v37 = vpack.c.bf16 %v261_v32, %v257_v31  ;;  %v256_v38 = vld [vmem:[#allocation5 + $0x340] sm:$0xff] }
  0xc8   :  { %1776 = vmatpush1.bf16.msra.mxu0 %v1775_v49  ;;  %v255_v34 = vld [vmem:[#allocation5 + $0x338] sm:$0xff]  ;;  %v1983_v36 = vpack.c.bf16 %v246_v30, %v242_v28  ;;  %v260_v39 = vld [vmem:[#allocation5 + $0x360] sm:$0xff]  ;;  %v250_v40 = vld [vmem:[#allocation5 + $0x310] sm:$0xff] }
  0xc9   :  { %1778 = vmatprep.subr.bf16.mxu0 %v1777_v51  ;;  %v1985_v41 = vpack.c.bf16 %v255_v34, %v251_v33  ;;  %v254_v42 = vld [vmem:[#allocation5 + $0x330] sm:$0xff]  ;;  %v265_v43 = vld [vmem:[#allocation5 + $0x388] sm:$0xff]  ;;  %v259_v45 = vld [vmem:[#allocation5 + $0x358] sm:$0xff]  ;;  %v1795_v47 = vpack.c.bf16 %v260_v39, %v256_v38 }
  0xca   :  { %1968 = vmatpush1.bf16.msra.mxu1 %v1967_v50  ;;  %v269_v44 = vld [vmem:[#allocation5 + $0x3a8] sm:$0xff]  ;;  %v263_v46 = vld [vmem:[#allocation5 + $0x378] sm:$0xff]  ;;  %v1987_v48 = vpack.c.bf16 %v254_v42, %v250_v40  ;;  %v264_v50 = vld [vmem:[#allocation5 + $0x380] sm:$0xff] }
  0xcb   :  { %1970 = vmatprep.subr.bf16.mxu1 %v1969_v55  ;;  %v1797_v49 = vpack.c.bf16 %v269_v44, %v265_v43  ;;  %v268_v51 = vld [vmem:[#allocation5 + $0x3a0] sm:$0xff]  ;;  %v258_v52 = vld [vmem:[#allocation5 + $0x350] sm:$0xff]  ;;  %v1989_v53 = vpack.c.bf16 %v263_v46, %v259_v45  ;;  %v273_v55 = vld [vmem:[#allocation5 + $0x3c8] sm:$0xff] }
  0xcc   :  { %1780 = vmatpush1.bf16.msra.mxu0 %v1779_v61  ;;  %v262_v54 = vld [vmem:[#allocation5 + $0x370] sm:$0xff]  ;;  %v277_v56 = vld [vmem:[#allocation5 + $0x3e8] sm:$0xff]  ;;  %v267_v57 = vld [vmem:[#allocation5 + $0x398] sm:$0xff]  ;;  %v1799_v59 = vpack.c.bf16 %v268_v51, %v264_v50 }
  0xcd   :  { %1782 = vmatprep.subr.bf16.mxu0 %v1781_v63  ;;  %v271_v58 = vld [vmem:[#allocation5 + $0x3b8] sm:$0xff]  ;;  %v1991_v60 = vpack.c.bf16 %v262_v54, %v258_v52  ;;  %v1801_v61 = vpack.c.bf16 %v277_v56, %v273_v55  ;;  %v276_v63 = vld [vmem:[#allocation5 + $0x3e0] sm:$0xff]  ;;  %v266_v1 = vld [vmem:[#allocation5 + $0x390] sm:$0xff] }
  0xce   :  { %1972 = vmatpush1.bf16.msra.mxu1 %v1971_v62  ;;  %v272_v62 = vld [vmem:[#allocation5 + $0x3c0] sm:$0xff]  ;;  %v1993_v2 = vpack.c.bf16 %v271_v58, %v267_v57  ;;  %v270_v3 = vld [vmem:[#allocation5 + $0x3b0] sm:$0xff]  ;;  %v285_v5 = vld [vmem:[#allocation5 + $0x428] sm:$0xff] }
  0xcf   :  { %1974 = vmatprep.subr.bf16.mxu1 %v1973_v4  ;;  %v281_v4 = vld [vmem:[#allocation5 + $0x408] sm:$0xff]  ;;  %v275_v6 = vld [vmem:[#allocation5 + $0x3d8] sm:$0xff]  ;;  %v1803_v8 = vpack.c.bf16 %v276_v63, %v272_v62  ;;  %v1995_v9 = vpack.c.bf16 %v270_v3, %v266_v1  ;;  %v274_v13 = vld [vmem:[#allocation5 + $0x3d0] sm:$0xff] }
  0xd0   :  { %1784 = vmatpush1.bf16.msra.mxu0 %v1783_v10  ;;  %v279_v7 = vld [vmem:[#allocation5 + $0x3f8] sm:$0xff]  ;;  %v1805_v10 = vpack.c.bf16 %v285_v5, %v281_v4  ;;  %v278_v15 = vld [vmem:[#allocation5 + $0x3f0] sm:$0xff]  ;;  %v293_v17 = vld [vmem:[#allocation5 + $0x468] sm:$0xff] }
  0xd1   :  { %1786 = vmatprep.subr.bf16.mxu0 %v1785_v12  ;;  %v284_v12 = vld [vmem:[#allocation5 + $0x420] sm:$0xff]  ;;  %v1997_v14 = vpack.c.bf16 %v279_v7, %v275_v6  ;;  %v283_v18 = vld [vmem:[#allocation5 + $0x418] sm:$0xff]  ;;  %v145_v20 = vld [vmem:[#allocation2] sm:$0xff]  ;;  %v1999_v22 = vpack.c.bf16 %v278_v15, %v274_v13 }
  0xd2   :  { %1976 = vmatpush1.bf16.msra.mxu1 %v1975_v11  ;;  %v280_v11 = vld [vmem:[#allocation5 + $0x400] sm:$0xff]  ;;  %v287_v19 = vld [vmem:[#allocation5 + $0x438] sm:$0xff]  ;;  %v282_v26 = vld [vmem:[#allocation5 + $0x410] sm:$0xff] }
  0xd3   :  { %1978 = vmatprep.subr.bf16.mxu1 %v1977_v16  ;;  %v289_v16 = vld [vmem:[#allocation5 + $0x448] sm:$0xff]  ;;  %v1807_v21 = vpack.c.bf16 %v284_v12, %v280_v11  ;;  %v2001_v27 = vpack.c.bf16 %v287_v19, %v283_v18  ;;  %v286_v28 = vld [vmem:[#allocation5 + $0x430] sm:$0xff]  ;;  %v291_v31 = vld [vmem:[#allocation5 + $0x458] sm:$0xff] }
  0xd4   :  { %1788 = vmatpush1.bf16.msra.mxu0 %v1787_v23  ;;  %v1809_v23 = vpack.c.bf16 %v293_v17, %v289_v16  ;;  %v301_v30 = vld [vmem:[#allocation5 + $0x4a8] sm:$0xff]  ;;  %v295_v32 = vld [vmem:[#allocation5 + $0x478] sm:$0xff]  ;;  %v2003_v34 = vpack.c.bf16 %v286_v28, %v282_v26  ;;  %v290_v38 = vld [vmem:[#allocation5 + $0x450] sm:$0xff] }
  0xd5   :  { %1790 = vmatprep.subr.bf16.mxu0 %v1789_v25  ;;  %v292_v25 = vld [vmem:[#allocation5 + $0x460] sm:$0xff]  ;;  %v2005_v39 = vpack.c.bf16 %v295_v32, %v291_v31  ;;  %v294_v40 = vld [vmem:[#allocation5 + $0x470] sm:$0xff]  ;;  %v309_v42 = vld [vmem:[#allocation5 + $0x4e8] sm:$0xff] }
  0xd6   :  { %1980 = vmatpush1.bf16.msra.mxu1 %v1979_v24  ;;  %v288_v24 = vld [vmem:[#allocation5 + $0x440] sm:$0xff]  ;;  %v299_v43 = vld [vmem:[#allocation5 + $0x498] sm:$0xff]  ;;  %v2007_v46 = vpack.c.bf16 %v294_v40, %v290_v38  ;;  %v298_v50 = vld [vmem:[#allocation5 + $0x490] sm:$0xff] }
  0xd7   :  { %1982 = vmatprep.subr.bf16.mxu1 %v1981_v29  ;;  %v297_v29 = vld [vmem:[#allocation5 + $0x488] sm:$0xff]  ;;  %v1811_v33 = vpack.c.bf16 %v292_v25, %v288_v24  ;;  %v303_v44 = vld [vmem:[#allocation5 + $0x4b8] sm:$0xff]  ;;  %v302_v52 = vld [vmem:[#allocation5 + $0x4b0] sm:$0xff] }
  0xd8   :  { %1792 = vmatpush1.bf16.msra.mxu0 %v1791_v35  ;;  %v1813_v35 = vpack.c.bf16 %v301_v30, %v297_v29  ;;  %v2009_v51 = vpack.c.bf16 %v303_v44, %v299_v43  ;;  %v317_v54 = vld [vmem:[#allocation5 + $0x528] sm:$0xff]  ;;  %v307_v55 = vld [vmem:[#allocation5 + $0x4d8] sm:$0xff]  ;;  %v2011_v58 = vpack.c.bf16 %v302_v52, %v298_v50  ;;  %v306_v62 = vld [vmem:[#allocation5 + $0x4d0] sm:$0xff] }
  0xd9   :  { %1794 = vmatprep.subr.bf16.mxu0 %v1793_v37  ;;  %v300_v37 = vld [vmem:[#allocation5 + $0x4a0] sm:$0xff]  ;;  %v311_v56 = vld [vmem:[#allocation5 + $0x4f8] sm:$0xff]  ;;  %v310_v1 = vld [vmem:[#allocation5 + $0x4f0] sm:$0xff] }
  0xda   :  { %1984 = vmatpush1.bf16.msra.mxu1 %v1983_v36  ;;  %v296_v36 = vld [vmem:[#allocation5 + $0x480] sm:$0xff]  ;;  %v2013_v63 = vpack.c.bf16 %v311_v56, %v307_v55  ;;  %v325_v3 = vld [vmem:[#allocation5 + $0x568] sm:$0xff]  ;;  %v315_v4 = vld [vmem:[#allocation5 + $0x518] sm:$0xff]  ;;  %v2015_v7 = vpack.c.bf16 %v310_v1, %v306_v62 }
  0xdb   :  { %1986 = vmatprep.subr.bf16.mxu1 %v1985_v41  ;;  %v305_v41 = vld [vmem:[#allocation5 + $0x4c8] sm:$0xff]  ;;  %v1815_v45 = vpack.c.bf16 %v300_v37, %v296_v36  ;;  %v319_v5 = vld [vmem:[#allocation5 + $0x538] sm:$0xff]  ;;  %v314_v11 = vld [vmem:[#allocation5 + $0x510] sm:$0xff] }
  0xdc   :  { %1796 = vmatpush1.bf16.msra.mxu0 %v1795_v47  ;;  %v1817_v47 = vpack.c.bf16 %v309_v42, %v305_v41  ;;  %v2017_v12 = vpack.c.bf16 %v319_v5, %v315_v4  ;;  %v318_v13 = vld [vmem:[#allocation5 + $0x530] sm:$0xff]  ;;  %v333_v15 = vld [vmem:[#allocation5 + $0x5a8] sm:$0xff]  ;;  %v323_v16 = vld [vmem:[#allocation5 + $0x558] sm:$0xff] }
  0xdd   :  { %1798 = vmatprep.subr.bf16.mxu0 %v1797_v49  ;;  %v308_v49 = vld [vmem:[#allocation5 + $0x4e0] sm:$0xff]  ;;  %v327_v17 = vld [vmem:[#allocation5 + $0x578] sm:$0xff]  ;;  %v326_v24 = vld [vmem:[#allocation5 + $0x570] sm:$0xff] }
  0xde   :  { %1988 = vmatpush1.bf16.msra.mxu1 %v1987_v48  ;;  %v304_v48 = vld [vmem:[#allocation5 + $0x4c0] sm:$0xff]  ;;  %v2021_v25 = vpack.c.bf16 %v327_v17, %v323_v16  ;;  %v337_v26 = vld [vmem:[#allocation5 + $0x5c8] sm:$0xff]  ;;  %v331_v29 = vld [vmem:[#allocation5 + $0x598] sm:$0xff] }
  0xdf   :  { %1990 = vmatprep.subr.bf16.mxu1 %v1989_v53  ;;  %v313_v53 = vld [vmem:[#allocation5 + $0x508] sm:$0xff]  ;;  %v1819_v57 = vpack.c.bf16 %v308_v49, %v304_v48  ;;  %v328_v19 = vld [vmem:[#allocation5 + $0x580] sm:$0xff]  ;;  %v335_v30 = vld [vmem:[#allocation5 + $0x5b8] sm:$0xff] }
  0xe0   :  { %1800 = vmatpush1.bf16.msra.mxu0 %v1799_v59  ;;  %v1821_v59 = vpack.c.bf16 %v317_v54, %v313_v53  ;;  %v148_v28 = vld [vmem:[#allocation2 + $0x18] sm:$0xff]  ;;  %v330_v36 = vld [vmem:[#allocation5 + $0x590] sm:$0xff]  ;;  %v2025_v37 = vpack.c.bf16 %v335_v30, %v331_v29  ;;  %v349_v40 = vld [vmem:[#allocation5 + $0x628] sm:$0xff] }
  0xe1   :  { %1802 = vmatprep.subr.bf16.mxu0 %v1801_v61  ;;  %v316_v61 = vld [vmem:[#allocation5 + $0x520] sm:$0xff]  ;;  %v334_v38 = vld [vmem:[#allocation5 + $0x5b0] sm:$0xff]  ;;  %v339_v41 = vld [vmem:[#allocation5 + $0x5d8] sm:$0xff] }
  0xe2   :  { %1992 = vmatpush1.bf16.msra.mxu1 %v1991_v60  ;;  %v312_v60 = vld [vmem:[#allocation5 + $0x500] sm:$0xff]  ;;  %v343_v42 = vld [vmem:[#allocation5 + $0x5f8] sm:$0xff]  ;;  %v2027_v44 = vpack.c.bf16 %v334_v38, %v330_v36  ;;  %v338_v48 = vld [vmem:[#allocation5 + $0x5d0] sm:$0xff] }
  0xe3   :  { %1994 = vmatprep.subr.bf16.mxu1 %v1993_v2  ;;  %v321_v2 = vld [vmem:[#allocation5 + $0x548] sm:$0xff]  ;;  %v1823_v6 = vpack.c.bf16 %v316_v61, %v312_v60  ;;  %v2029_v49 = vpack.c.bf16 %v343_v42, %v339_v41  ;;  %v342_v50 = vld [vmem:[#allocation5 + $0x5f0] sm:$0xff]  ;;  %v347_v53 = vld [vmem:[#allocation5 + $0x618] sm:$0xff] }
  0xe4   :  { %1804 = vmatpush1.bf16.msra.mxu0 %v1803_v8  ;;  %v1825_v8 = vpack.c.bf16 %v325_v3, %v321_v2  ;;  %v357_v52 = vld [vmem:[#allocation5 + $0x668] sm:$0xff]  ;;  %v351_v54 = vld [vmem:[#allocation5 + $0x638] sm:$0xff]  ;;  %v2031_v56 = vpack.c.bf16 %v342_v50, %v338_v48  ;;  %v346_v60 = vld [vmem:[#allocation5 + $0x610] sm:$0xff] }
  0xe5   :  { %1806 = vmatprep.subr.bf16.mxu0 %v1805_v10  ;;  %v324_v10 = vld [vmem:[#allocation5 + $0x560] sm:$0xff]  ;;  %v2033_v61 = vpack.c.bf16 %v351_v54, %v347_v53  ;;  %v350_v62 = vld [vmem:[#allocation5 + $0x630] sm:$0xff]  ;;  %v365_v1 = vld [vmem:[#allocation5 + $0x6a8] sm:$0xff] }
  0xe6   :  { %1996 = vmatpush1.bf16.msra.mxu1 %v1995_v9  ;;  %v320_v9 = vld [vmem:[#allocation5 + $0x540] sm:$0xff]  ;;  %v355_v2 = vld [vmem:[#allocation5 + $0x658] sm:$0xff]  ;;  %v2035_v5 = vpack.c.bf16 %v350_v62, %v346_v60  ;;  %v385_v36 = vld [vmem:[#allocation5 + $0x748] sm:$0xff] }
  0xe7   :  { %1998 = vmatprep.subr.bf16.mxu1 %v1997_v14  ;;  %635 = vmatmul.mubr.f32.vlgmr.msra.gmra.mrb[0].mxu0 %v145_v20  ;;  %v329_v14 = vld [vmem:[#allocation5 + $0x588] sm:$0xff]  ;;  %v1827_v18 = vpack.c.bf16 %v324_v10, %v320_v9  ;;  %v359_v3 = vld [vmem:[#allocation5 + $0x678] sm:$0xff]  ;;  %v354_v9 = vld [vmem:[#allocation5 + $0x650] sm:$0xff] }
  0xe8   :  { %1808 = vmatpush1.bf16.msra.mxu0 %v1807_v21  ;;  %v1829_v21 = vpack.c.bf16 %v333_v15, %v329_v14  ;;  %705 = vmatprep.mubr.f32.mxu0 %v148_v28  ;;  %v2037_v10 = vpack.c.bf16 %v359_v3, %v355_v2  ;;  %v363_v14 = vld [vmem:[#allocation5 + $0x698] sm:$0xff]  ;;  %v393_v48 = vld [vmem:[#allocation5 + $0x788] sm:$0xff] }
  0xe9   :  { %1810 = vmatprep.subr.bf16.mxu0 %v1809_v23  ;;  %v322_v23 = vld [vmem:[#allocation5 + $0x550] sm:$0xff]  ;;  %v367_v15 = vld [vmem:[#allocation5 + $0x6b8] sm:$0xff]  ;;  %v401_v60 = vld [vmem:[#allocation5 + $0x7c8] sm:$0xff] }
  0xea   :  { %2000 = vmatpush1.bf16.msra.mxu1 %v1999_v22  ;;  %v332_v22 = vld [vmem:[#allocation5 + $0x5a0] sm:$0xff]  ;;  %v2023_v32 = vpack.c.bf16 %v326_v24, %v322_v23  ;;  %v366_v23 = vld [vmem:[#allocation5 + $0x6b0] sm:$0xff]  ;;  %v377_v24 = vld [vmem:[#allocation5 + $0x708] sm:$0xff] }
  0xeb   :  { %2002 = vmatprep.subr.bf16.mxu1 %v2001_v27  ;;  %v341_v27 = vld [vmem:[#allocation5 + $0x5e8] sm:$0xff]  ;;  %v1831_v31 = vpack.c.bf16 %v332_v22, %v328_v19  ;;  %v368_v19 = vld [vmem:[#allocation5 + $0x6c0] sm:$0xff]  ;;  %v2041_v22 = vpack.c.bf16 %v367_v15, %v363_v14  ;;  %v379_v38 = vld [vmem:[#allocation5 + $0x718] sm:$0xff] }
  0xec   :  { %1812 = vmatpush1.bf16.msra.mxu0 %v1811_v33  ;;  %v1833_v33 = vpack.c.bf16 %v341_v27, %v337_v26  ;;  %v371_v26 = vld [vmem:[#allocation5 + $0x6d8] sm:$0xff] }
  0xed   :  { %919 = vmatmul.mubr.f32.vlgmr.msra.gmra.mrb[2].mxu1 %v145_v20  ;;  %1814 = vmatprep.subr.bf16.mxu0 %v1813_v35  ;;  %v2019_v20 = vpack.c.bf16 %v318_v13, %v314_v11  ;;  %v340_v35 = vld [vmem:[#allocation5 + $0x5e0] sm:$0xff]  ;;  %v358_v11 = vld [vmem:[#allocation5 + $0x670] sm:$0xff]  ;;  %v373_v13 = vld [vmem:[#allocation5 + $0x6e8] sm:$0xff] }
  0xee   :  { %2004 = vmatpush1.bf16.msra.mxu1 %v2003_v34  ;;  %989 = vmatprep.mubr.f32.mxu1 %v148_v28  ;;  %v336_v34 = vld [vmem:[#allocation5 + $0x5c0] sm:$0xff]  ;;  %v2039_v17 = vpack.c.bf16 %v358_v11, %v354_v9  ;;  %v375_v27 = vld [vmem:[#allocation5 + $0x6f8] sm:$0xff]  ;;  %v409_v9 = vld [vmem:[#allocation5 + $0x808] sm:$0xff] }
  0xef   :  { %2006 = vmatprep.subr.bf16.mxu1 %v2005_v39  ;;  %v345_v39 = vld [vmem:[#allocation5 + $0x608] sm:$0xff]  ;;  %v1835_v43 = vpack.c.bf16 %v340_v35, %v336_v34  ;;  %v2045_v34 = vpack.c.bf16 %v375_v27, %v371_v26  ;;  %v374_v35 = vld [vmem:[#allocation5 + $0x6f0] sm:$0xff]  ;;  %v387_v50 = vld [vmem:[#allocation5 + $0x758] sm:$0xff] }
  0xf0   :  { %1816 = vmatpush1.bf16.msra.mxu0 %v1815_v45  ;;  %v1837_v45 = vpack.c.bf16 %v349_v40, %v345_v39  ;;  %v383_v39 = vld [vmem:[#allocation5 + $0x738] sm:$0xff]  ;;  %v416_v27 = vld [vmem:[#allocation5 + $0x840] sm:$0xff] }
  0xf1   :  { %1818 = vmatprep.subr.bf16.mxu0 %v1817_v47  ;;  %v348_v47 = vld [vmem:[#allocation5 + $0x620] sm:$0xff]  ;;  %v395_v62 = vld [vmem:[#allocation5 + $0x798] sm:$0xff] }
  0xf2   :  { %2008 = vmatpush1.bf16.msra.mxu1 %v2007_v46  ;;  %v344_v46 = vld [vmem:[#allocation5 + $0x600] sm:$0xff]  ;;  %v403_v11 = vld [vmem:[#allocation5 + $0x7d8] sm:$0xff] }
  0xf3   :  { %2010 = vmatprep.subr.bf16.mxu1 %v2009_v51  ;;  %v353_v51 = vld [vmem:[#allocation5 + $0x648] sm:$0xff]  ;;  %v1839_v55 = vpack.c.bf16 %v348_v47, %v344_v46  ;;  %v2049_v46 = vpack.c.bf16 %v383_v39, %v379_v38  ;;  %v382_v47 = vld [vmem:[#allocation5 + $0x730] sm:$0xff]  ;;  %v423_v38 = vld [vmem:[#allocation5 + $0x878] sm:$0xff] }
  0xf4   :  { %1820 = vmatpush1.bf16.msra.mxu0 %v1819_v57  ;;  %v1841_v57 = vpack.c.bf16 %v357_v52, %v353_v51  ;;  %v391_v51 = vld [vmem:[#allocation5 + $0x778] sm:$0xff] }
  0xf5   :  { %1822 = vmatprep.subr.bf16.mxu0 %v1821_v59  ;;  %v356_v59 = vld [vmem:[#allocation5 + $0x660] sm:$0xff] }
  0xf6   :  { %2012 = vmatpush1.bf16.msra.mxu1 %v2011_v58  ;;  %v352_v58 = vld [vmem:[#allocation5 + $0x640] sm:$0xff] }
  0xf7   :  { %2014 = vmatprep.subr.bf16.mxu1 %v2013_v63  ;;  %v361_v63 = vld [vmem:[#allocation5 + $0x688] sm:$0xff]  ;;  %v1843_v4 = vpack.c.bf16 %v356_v59, %v352_v58  ;;  %v2053_v58 = vpack.c.bf16 %v391_v51, %v387_v50  ;;  %v390_v59 = vld [vmem:[#allocation5 + $0x770] sm:$0xff]  ;;  %v431_v50 = vld [vmem:[#allocation5 + $0x8b8] sm:$0xff] }
  0xf8   :  { %1824 = vmatpush1.bf16.msra.mxu0 %v1823_v6  ;;  %v1845_v6 = vpack.c.bf16 %v365_v1, %v361_v63  ;;  %v399_v63 = vld [vmem:[#allocation5 + $0x7b8] sm:$0xff] }
  0xf9   :  { %1826 = vmatprep.subr.bf16.mxu0 %v1825_v8  ;;  %v364_v8 = vld [vmem:[#allocation5 + $0x6a0] sm:$0xff] }
  0xfa   :  { %2016 = vmatpush1.bf16.msra.mxu1 %v2015_v7  ;;  %v360_v7 = vld [vmem:[#allocation5 + $0x680] sm:$0xff] }
  0xfb   :  { %2018 = vmatprep.subr.bf16.mxu1 %v2017_v12  ;;  %v369_v12 = vld [vmem:[#allocation5 + $0x6c8] sm:$0xff]  ;;  %v1847_v16 = vpack.c.bf16 %v364_v8, %v360_v7  ;;  %v2057_v7 = vpack.c.bf16 %v399_v63, %v395_v62  ;;  %v398_v8 = vld [vmem:[#allocation5 + $0x7b0] sm:$0xff]  ;;  %v439_v62 = vld [vmem:[#allocation5 + $0x8f8] sm:$0xff] }
  0xfc   :  { %1828 = vmatpush1.bf16.msra.mxu0 %v1827_v18  ;;  %v1849_v18 = vpack.c.bf16 %v373_v13, %v369_v12  ;;  %v407_v12 = vld [vmem:[#allocation5 + $0x7f8] sm:$0xff] }
  0xfd   :  { %1830 = vmatprep.subr.bf16.mxu0 %v1829_v21  ;;  %v362_v21 = vld [vmem:[#allocation5 + $0x690] sm:$0xff] }
  0xfe   :  { %2020 = vmatpush1.bf16.msra.mxu1 %v2019_v20  ;;  %v372_v20 = vld [vmem:[#allocation5 + $0x6e0] sm:$0xff]  ;;  %v2043_v29 = vpack.c.bf16 %v366_v23, %v362_v21  ;;  %v417_v21 = vld [vmem:[#allocation5 + $0x848] sm:$0xff]  ;;  %v411_v23 = vld [vmem:[#allocation5 + $0x818] sm:$0xff] }
  0xff   :  { %2022 = vmatprep.subr.bf16.mxu1 %v2021_v25  ;;  %v381_v25 = vld [vmem:[#allocation5 + $0x728] sm:$0xff]  ;;  %v1851_v28 = vpack.c.bf16 %v372_v20, %v368_v19  ;;  %v2061_v19 = vpack.c.bf16 %v407_v12, %v403_v11  ;;  %v406_v20 = vld [vmem:[#allocation5 + $0x7f0] sm:$0xff]  ;;  %v447_v11 = vld [vmem:[#allocation5 + $0x938] sm:$0xff] }
 0x100   :  { %1832 = vmatpush1.bf16.msra.mxu0 %v1831_v31  ;;  %v1853_v30 = vpack.c.bf16 %v381_v25, %v377_v24  ;;  %v376_v31 = vld [vmem:[#allocation5 + $0x700] sm:$0xff]  ;;  %v415_v24 = vld [vmem:[#allocation5 + $0x838] sm:$0xff] }
 0x101   :  { %1834 = vmatprep.subr.bf16.mxu0 %v1833_v33  ;;  %v370_v33 = vld [vmem:[#allocation5 + $0x6d0] sm:$0xff]  ;;  %v147_v25 = vld [vmem:[#allocation2 + $0x10] sm:$0xff] }
 0x102   :  { %2024 = vmatpush1.bf16.msra.mxu1 %v2023_v32  ;;  %v380_v32 = vld [vmem:[#allocation5 + $0x720] sm:$0xff]  ;;  %v2047_v41 = vpack.c.bf16 %v374_v35, %v370_v33  ;;  %v2065_v33 = vpack.c.bf16 %v415_v24, %v411_v23  ;;  %v425_v35 = vld [vmem:[#allocation5 + $0x888] sm:$0xff]  ;;  %v455_v23 = vld [vmem:[#allocation5 + $0x978] sm:$0xff] }
 0x103   :  { %2026 = vmatprep.subr.bf16.mxu1 %v2025_v37  ;;  %v389_v37 = vld [vmem:[#allocation5 + $0x768] sm:$0xff]  ;;  %v1855_v40 = vpack.c.bf16 %v380_v32, %v376_v31  ;;  %v410_v31 = vld [vmem:[#allocation5 + $0x810] sm:$0xff] }
 0x104   :  { %1836 = vmatpush1.bf16.msra.mxu0 %v1835_v43  ;;  %v1857_v42 = vpack.c.bf16 %v389_v37, %v385_v36  ;;  %v384_v43 = vld [vmem:[#allocation5 + $0x740] sm:$0xff]  ;;  %v150_v32 = vld [vmem:[#allocation2 + $0x28] sm:$0xff]  ;;  %v429_v36 = vld [vmem:[#allocation5 + $0x8a8] sm:$0xff] }
 0x105   :  { %1838 = vmatprep.subr.bf16.mxu0 %v1837_v45  ;;  %v378_v45 = vld [vmem:[#allocation5 + $0x710] sm:$0xff]  ;;  %v419_v37 = vld [vmem:[#allocation5 + $0x858] sm:$0xff] }
 0x106   :  { %2028 = vmatpush1.bf16.msra.mxu1 %v2027_v44  ;;  %v388_v44 = vld [vmem:[#allocation5 + $0x760] sm:$0xff]  ;;  %v2051_v53 = vpack.c.bf16 %v382_v47, %v378_v45  ;;  %v2069_v45 = vpack.c.bf16 %v423_v38, %v419_v37  ;;  %v433_v47 = vld [vmem:[#allocation5 + $0x8c8] sm:$0xff] }
 0x107   :  { %2030 = vmatprep.subr.bf16.mxu1 %v2029_v49  ;;  %v397_v49 = vld [vmem:[#allocation5 + $0x7a8] sm:$0xff]  ;;  %v1859_v52 = vpack.c.bf16 %v388_v44, %v384_v43  ;;  %v428_v43 = vld [vmem:[#allocation5 + $0x8a0] sm:$0xff]  ;;  %v418_v44 = vld [vmem:[#allocation5 + $0x850] sm:$0xff] }
 0x108   :  { %1840 = vmatpush1.bf16.msra.mxu0 %v1839_v55  ;;  %v1861_v54 = vpack.c.bf16 %v397_v49, %v393_v48  ;;  %v392_v55 = vld [vmem:[#allocation5 + $0x780] sm:$0xff]  ;;  %v437_v48 = vld [vmem:[#allocation5 + $0x8e8] sm:$0xff]  ;;  %v427_v49 = vld [vmem:[#allocation5 + $0x898] sm:$0xff] }
 0x109   :  { %1842 = vmatprep.subr.bf16.mxu0 %v1841_v57  ;;  %v386_v57 = vld [vmem:[#allocation5 + $0x750] sm:$0xff] }
 0x10a   :  { %2032 = vmatpush1.bf16.msra.mxu1 %v2031_v56  ;;  %v396_v56 = vld [vmem:[#allocation5 + $0x7a0] sm:$0xff]  ;;  %v2055_v2 = vpack.c.bf16 %v390_v59, %v386_v57  ;;  %v2073_v57 = vpack.c.bf16 %v431_v50, %v427_v49  ;;  %v441_v59 = vld [vmem:[#allocation5 + $0x908] sm:$0xff] }
 0x10b   :  { %2034 = vmatprep.subr.bf16.mxu1 %v2033_v61  ;;  %v405_v61 = vld [vmem:[#allocation5 + $0x7e8] sm:$0xff]  ;;  %v1863_v1 = vpack.c.bf16 %v396_v56, %v392_v55  ;;  %v436_v55 = vld [vmem:[#allocation5 + $0x8e0] sm:$0xff]  ;;  %v426_v56 = vld [vmem:[#allocation5 + $0x890] sm:$0xff] }
 0x10c   :  { %1844 = vmatpush1.bf16.msra.mxu0 %v1843_v4  ;;  %v1865_v3 = vpack.c.bf16 %v405_v61, %v401_v60  ;;  %v400_v4 = vld [vmem:[#allocation5 + $0x7c0] sm:$0xff]  ;;  %v445_v60 = vld [vmem:[#allocation5 + $0x928] sm:$0xff]  ;;  %v435_v61 = vld [vmem:[#allocation5 + $0x8d8] sm:$0xff] }
 0x10d   :  { %1846 = vmatprep.subr.bf16.mxu0 %v1845_v6  ;;  %v394_v6 = vld [vmem:[#allocation5 + $0x790] sm:$0xff] }
 0x10e   :  { %2036 = vmatpush1.bf16.msra.mxu1 %v2035_v5  ;;  %v404_v5 = vld [vmem:[#allocation5 + $0x7e0] sm:$0xff]  ;;  %v2059_v14 = vpack.c.bf16 %v398_v8, %v394_v6  ;;  %v2077_v6 = vpack.c.bf16 %v439_v62, %v435_v61  ;;  %v449_v8 = vld [vmem:[#allocation5 + $0x948] sm:$0xff] }
 0x10f   :  { %2038 = vmatprep.subr.bf16.mxu1 %v2037_v10  ;;  %v413_v10 = vld [vmem:[#allocation5 + $0x828] sm:$0xff]  ;;  %v1867_v13 = vpack.c.bf16 %v404_v5, %v400_v4  ;;  %v444_v4 = vld [vmem:[#allocation5 + $0x920] sm:$0xff]  ;;  %v434_v5 = vld [vmem:[#allocation5 + $0x8d0] sm:$0xff] }
 0x110   :  { %1848 = vmatpush1.bf16.msra.mxu0 %v1847_v16  ;;  %v1869_v15 = vpack.c.bf16 %v413_v10, %v409_v9  ;;  %v408_v16 = vld [vmem:[#allocation5 + $0x800] sm:$0xff]  ;;  %v453_v9 = vld [vmem:[#allocation5 + $0x968] sm:$0xff]  ;;  %v443_v10 = vld [vmem:[#allocation5 + $0x918] sm:$0xff] }
 0x111   :  { %1850 = vmatprep.subr.bf16.mxu0 %v1849_v18  ;;  %v402_v18 = vld [vmem:[#allocation5 + $0x7d0] sm:$0xff] }
 0x112   :  { %2040 = vmatpush1.bf16.msra.mxu1 %v2039_v17  ;;  %v412_v17 = vld [vmem:[#allocation5 + $0x820] sm:$0xff] }
 0x113   :  { %2042 = vmatprep.subr.bf16.mxu1 %v2041_v22  ;;  %v421_v22 = vld [vmem:[#allocation5 + $0x868] sm:$0xff]  ;;  %v1871_v26 = vpack.c.bf16 %v412_v17, %v408_v16  ;;  %v452_v16 = vld [vmem:[#allocation5 + $0x960] sm:$0xff]  ;;  %v442_v17 = vld [vmem:[#allocation5 + $0x910] sm:$0xff] }
 0x114   :  { %1852 = vmatpush1.bf16.msra.mxu0 %v1851_v28  ;;  %v2063_v28 = vpack.c.bf16 %v406_v20, %v402_v18  ;;  %v2081_v18 = vpack.c.bf16 %v447_v11, %v443_v10  ;;  %v457_v20 = vld [vmem:[#allocation5 + $0x988] sm:$0xff] }
 0x115   :  { %1854 = vmatprep.subr.bf16.mxu0 %v1853_v30  ;;  %v420_v30 = vld [vmem:[#allocation5 + $0x860] sm:$0xff] }
 0x116   :  { %2044 = vmatpush1.bf16.msra.mxu1 %v2043_v29  ;;  %v1873_v29 = vpack.c.bf16 %v421_v22, %v417_v21  ;;  %v1875_v39 = vpack.c.bf16 %v420_v30, %v416_v27  ;;  %v461_v21 = vld [vmem:[#allocation5 + $0x9a8] sm:$0xff]  ;;  %v451_v22 = vld [vmem:[#allocation5 + $0x958] sm:$0xff]  ;;  %v456_v27 = vld [vmem:[#allocation5 + $0x980] sm:$0xff] }
 0x117   :  { %2046 = vmatprep.subr.bf16.mxu1 %v2045_v34  ;;  %v414_v34 = vld [vmem:[#allocation5 + $0x830] sm:$0xff]  ;;  %v2085_v30 = vpack.c.bf16 %v455_v23, %v451_v22 }
 0x118   :  { %1856 = vmatpush1.bf16.msra.mxu0 %v1855_v40  ;;  %v2067_v40 = vpack.c.bf16 %v414_v34, %v410_v31  ;;  %v454_v31 = vld [vmem:[#allocation5 + $0x970] sm:$0xff]  ;;  %v459_v34 = vld [vmem:[#allocation5 + $0x998] sm:$0xff] }
 0x119   :  { %1858 = vmatprep.subr.bf16.mxu0 %v1857_v42  ;;  %v424_v42 = vld [vmem:[#allocation5 + $0x880] sm:$0xff] }
 0x11a   :  { %2048 = vmatpush1.bf16.msra.mxu1 %v2047_v41  ;;  %v1877_v41 = vpack.c.bf16 %v429_v36, %v425_v35  ;;  %v1879_v51 = vpack.c.bf16 %v428_v43, %v424_v42  ;;  %v463_v35 = vld [vmem:[#allocation5 + $0x9b8] sm:$0xff]  ;;  %v462_v43 = vld [vmem:[#allocation5 + $0x9b0] sm:$0xff] }
 0x11b   :  { %2050 = vmatprep.subr.bf16.mxu1 %v2049_v46  ;;  %v422_v46 = vld [vmem:[#allocation5 + $0x870] sm:$0xff]  ;;  %v2089_v42 = vpack.c.bf16 %v463_v35, %v459_v34 }
 0x11c   :  { %1860 = vmatpush1.bf16.msra.mxu0 %v1859_v52  ;;  %v2071_v52 = vpack.c.bf16 %v422_v46, %v418_v44  ;;  %v473_v44 = vld [vmem:[#allocation5 + $0xa08] sm:$0xff]  ;;  %v467_v46 = vld [vmem:[#allocation5 + $0x9d8] sm:$0xff] }
 0x11d   :  { %1862 = vmatprep.subr.bf16.mxu0 %v1861_v54  ;;  %v432_v54 = vld [vmem:[#allocation5 + $0x8c0] sm:$0xff] }
 0x11e   :  { %2052 = vmatpush1.bf16.msra.mxu1 %v2051_v53  ;;  %v1881_v53 = vpack.c.bf16 %v437_v48, %v433_v47  ;;  %v1883_v63 = vpack.c.bf16 %v436_v55, %v432_v54  ;;  %v471_v47 = vld [vmem:[#allocation5 + $0x9f8] sm:$0xff]  ;;  %v470_v55 = vld [vmem:[#allocation5 + $0x9f0] sm:$0xff] }
 0x11f   :  { %2054 = vmatprep.subr.bf16.mxu1 %v2053_v58  ;;  %v430_v58 = vld [vmem:[#allocation5 + $0x8b0] sm:$0xff]  ;;  %v2093_v54 = vpack.c.bf16 %v471_v47, %v467_v46 }
 0x120   :  { %1864 = vmatpush1.bf16.msra.mxu0 %v1863_v1  ;;  %v2075_v1 = vpack.c.bf16 %v430_v58, %v426_v56  ;;  %v481_v56 = vld [vmem:[#allocation5 + $0xa48] sm:$0xff]  ;;  %v475_v58 = vld [vmem:[#allocation5 + $0xa18] sm:$0xff] }
 0x121   :  { %1866 = vmatprep.subr.bf16.mxu0 %v1865_v3  ;;  %v440_v3 = vld [vmem:[#allocation5 + $0x900] sm:$0xff] }
 0x122   :  { %2056 = vmatpush1.bf16.msra.mxu1 %v2055_v2  ;;  %v1885_v2 = vpack.c.bf16 %v445_v60, %v441_v59  ;;  %v1887_v12 = vpack.c.bf16 %v444_v4, %v440_v3  ;;  %v479_v59 = vld [vmem:[#allocation5 + $0xa38] sm:$0xff]  ;;  %v478_v4 = vld [vmem:[#allocation5 + $0xa30] sm:$0xff] }
 0x123   :  { %2058 = vmatprep.subr.bf16.mxu1 %v2057_v7  ;;  %v438_v7 = vld [vmem:[#allocation5 + $0x8f0] sm:$0xff]  ;;  %v2097_v3 = vpack.c.bf16 %v479_v59, %v475_v58 }
 0x124   :  { %1868 = vmatpush1.bf16.msra.mxu0 %v1867_v13  ;;  %v2079_v13 = vpack.c.bf16 %v438_v7, %v434_v5  ;;  %v489_v5 = vld [vmem:[#allocation5 + $0xa88] sm:$0xff]  ;;  %v483_v7 = vld [vmem:[#allocation5 + $0xa58] sm:$0xff] }
 0x125   :  { %1870 = vmatprep.subr.bf16.mxu0 %v1869_v15  ;;  %v448_v15 = vld [vmem:[#allocation5 + $0x940] sm:$0xff] }
 0x126   :  { %2060 = vmatpush1.bf16.msra.mxu1 %v2059_v14  ;;  %v1889_v14 = vpack.c.bf16 %v453_v9, %v449_v8  ;;  %v1891_v24 = vpack.c.bf16 %v452_v16, %v448_v15  ;;  %v487_v8 = vld [vmem:[#allocation5 + $0xa78] sm:$0xff]  ;;  %v486_v16 = vld [vmem:[#allocation5 + $0xa70] sm:$0xff] }
 0x127   :  { %2062 = vmatprep.subr.bf16.mxu1 %v2061_v19  ;;  %706 = vmatmul.mubr.f32.vlgmr.msra.gmra.mrb[0].mxu0 %v147_v25  ;;  %v446_v19 = vld [vmem:[#allocation5 + $0x930] sm:$0xff]  ;;  %v2101_v15 = vpack.c.bf16 %v487_v8, %v483_v7 }
 0x128   :  { %1872 = vmatpush1.bf16.msra.mxu0 %v1871_v26  ;;  %776 = vmatprep.mubr.f32.mxu0 %v150_v32  ;;  %v1893_v26 = vpack.c.bf16 %v461_v21, %v457_v20  ;;  %v495_v20 = vld [vmem:[#allocation5 + $0xab8] sm:$0xff] }
 0x129   :  { %1874 = vmatprep.subr.bf16.mxu0 %v1873_v29  ;;  %v450_v29 = vld [vmem:[#allocation5 + $0x950] sm:$0xff] }
 0x12a   :  { %2064 = vmatpush1.bf16.msra.mxu1 %v2063_v28  ;;  %v460_v28 = vld [vmem:[#allocation5 + $0x9a0] sm:$0xff]  ;;  %v2087_v37 = vpack.c.bf16 %v454_v31, %v450_v29  ;;  %v505_v29 = vld [vmem:[#allocation5 + $0xb08] sm:$0xff]  ;;  %v499_v31 = vld [vmem:[#allocation5 + $0xad8] sm:$0xff] }
 0x12b   :  { %2066 = vmatprep.subr.bf16.mxu1 %v2065_v33  ;;  %v469_v33 = vld [vmem:[#allocation5 + $0x9e8] sm:$0xff]  ;;  %v1895_v36 = vpack.c.bf16 %v460_v28, %v456_v27  ;;  %v494_v28 = vld [vmem:[#allocation5 + $0xab0] sm:$0xff] }
 0x12c   :  { %1876 = vmatpush1.bf16.msra.mxu0 %v1875_v39  ;;  %v464_v39 = vld [vmem:[#allocation5 + $0x9c0] sm:$0xff] }
 0x12d   :  { %990 = vmatmul.mubr.f32.vlgmr.msra.gmra.mrb[2].mxu1 %v147_v25  ;;  %1878 = vmatprep.subr.bf16.mxu0 %v1877_v41  ;;  %v2083_v25 = vpack.c.bf16 %v446_v19, %v442_v17  ;;  %v458_v41 = vld [vmem:[#allocation5 + $0x990] sm:$0xff]  ;;  %v497_v17 = vld [vmem:[#allocation5 + $0xac8] sm:$0xff]  ;;  %v491_v19 = vld [vmem:[#allocation5 + $0xa98] sm:$0xff] }
 0x12e   :  { %2068 = vmatpush1.bf16.msra.mxu1 %v2067_v40  ;;  %1060 = vmatprep.mubr.f32.mxu1 %v150_v32  ;;  %v465_v32 = vld [vmem:[#allocation5 + $0x9c8] sm:$0xff]  ;;  %v468_v40 = vld [vmem:[#allocation5 + $0x9e0] sm:$0xff]  ;;  %v2091_v49 = vpack.c.bf16 %v462_v43, %v458_v41  ;;  %v2105_v27 = vpack.c.bf16 %v495_v20, %v491_v19  ;;  %v507_v43 = vld [vmem:[#allocation5 + $0xb18] sm:$0xff] }
 0x12f   :  { %2070 = vmatprep.subr.bf16.mxu1 %v2069_v45  ;;  %v1897_v38 = vpack.c.bf16 %v469_v33, %v465_v32  ;;  %v477_v45 = vld [vmem:[#allocation5 + $0xa28] sm:$0xff]  ;;  %v1899_v48 = vpack.c.bf16 %v468_v40, %v464_v39  ;;  %v503_v32 = vld [vmem:[#allocation5 + $0xaf8] sm:$0xff]  ;;  %v502_v40 = vld [vmem:[#allocation5 + $0xaf0] sm:$0xff] }
 0x130   :  { %1880 = vmatpush1.bf16.msra.mxu0 %v1879_v51  ;;  %v1901_v50 = vpack.c.bf16 %v477_v45, %v473_v44  ;;  %v472_v51 = vld [vmem:[#allocation5 + $0xa00] sm:$0xff]  ;;  %v2109_v39 = vpack.c.bf16 %v503_v32, %v499_v31  ;;  %v513_v41 = vld [vmem:[#allocation5 + $0xb48] sm:$0xff]  ;;  %v511_v44 = vld [vmem:[#allocation5 + $0xb38] sm:$0xff] }
 0x131   :  { %1882 = vmatprep.subr.bf16.mxu0 %v1881_v53  ;;  %v466_v53 = vld [vmem:[#allocation5 + $0x9d0] sm:$0xff] }
 0x132   :  { %2072 = vmatpush1.bf16.msra.mxu1 %v2071_v52  ;;  %v476_v52 = vld [vmem:[#allocation5 + $0xa20] sm:$0xff]  ;;  %v2095_v61 = vpack.c.bf16 %v470_v55, %v466_v53  ;;  %v521_v53 = vld [vmem:[#allocation5 + $0xb88] sm:$0xff]  ;;  %v515_v55 = vld [vmem:[#allocation5 + $0xb58] sm:$0xff] }
 0x133   :  { %2074 = vmatprep.subr.bf16.mxu1 %v2073_v57  ;;  %v485_v57 = vld [vmem:[#allocation5 + $0xa68] sm:$0xff]  ;;  %v1903_v60 = vpack.c.bf16 %v476_v52, %v472_v51  ;;  %v2113_v51 = vpack.c.bf16 %v511_v44, %v507_v43  ;;  %v510_v52 = vld [vmem:[#allocation5 + $0xb30] sm:$0xff] }
 0x134   :  { %1884 = vmatpush1.bf16.msra.mxu0 %v1883_v63  ;;  %v1905_v62 = vpack.c.bf16 %v485_v57, %v481_v56  ;;  %v480_v63 = vld [vmem:[#allocation5 + $0xa40] sm:$0xff]  ;;  %v519_v56 = vld [vmem:[#allocation5 + $0xb78] sm:$0xff]  ;;  %v530_v20 = vld [vmem:[#allocation5 + $0xbd0] sm:$0xff] }
 0x135   :  { %1886 = vmatprep.subr.bf16.mxu0 %v1885_v2  ;;  %v474_v2 = vld [vmem:[#allocation5 + $0xa10] sm:$0xff]  ;;  %v1150_v43 = vld [vmem:[#allocation8 + $0x40] sm:$0xff] }
 0x136   :  { %2076 = vmatpush1.bf16.msra.mxu1 %v2075_v1  ;;  %v484_v1 = vld [vmem:[#allocation5 + $0xa60] sm:$0xff]  ;;  %v2099_v10 = vpack.c.bf16 %v478_v4, %v474_v2  ;;  %v529_v2 = vld [vmem:[#allocation5 + $0xbc8] sm:$0xff]  ;;  %v523_v4 = vld [vmem:[#allocation5 + $0xb98] sm:$0xff] }
 0x137   :  { %2078 = vmatprep.subr.bf16.mxu1 %v2077_v6  ;;  %v493_v6 = vld [vmem:[#allocation5 + $0xaa8] sm:$0xff]  ;;  %v1907_v9 = vpack.c.bf16 %v484_v1, %v480_v63  ;;  %v2117_v63 = vpack.c.bf16 %v519_v56, %v515_v55  ;;  %v518_v1 = vld [vmem:[#allocation5 + $0xb70] sm:$0xff] }
 0x138   :  { %1888 = vmatpush1.bf16.msra.mxu0 %v1887_v12  ;;  %v1909_v11 = vpack.c.bf16 %v493_v6, %v489_v5  ;;  %v488_v12 = vld [vmem:[#allocation5 + $0xa80] sm:$0xff]  ;;  %v527_v5 = vld [vmem:[#allocation5 + $0xbb8] sm:$0xff] }
 0x139   :  { %1890 = vmatprep.subr.bf16.mxu0 %v1889_v14  ;;  %v482_v14 = vld [vmem:[#allocation5 + $0xa50] sm:$0xff]  ;;  %v1158_v56 = vld [vmem:[#allocation8 + $0x80] sm:$0xff] }
 0x13a   :  { %2080 = vmatpush1.bf16.msra.mxu1 %v2079_v13  ;;  %v492_v13 = vld [vmem:[#allocation5 + $0xaa0] sm:$0xff]  ;;  %v2103_v22 = vpack.c.bf16 %v486_v16, %v482_v14  ;;  %v1143_v14 = vld [vmem:[#allocation8 + $0x8] sm:$0xff]  ;;  %v531_v16 = vld [vmem:[#allocation5 + $0xbd8] sm:$0xff] }
 0x13b   :  { %2082 = vmatprep.subr.bf16.mxu1 %v2081_v18  ;;  %v501_v18 = vld [vmem:[#allocation5 + $0xae8] sm:$0xff]  ;;  %v1911_v21 = vpack.c.bf16 %v492_v13, %v488_v12  ;;  %v2121_v12 = vpack.c.bf16 %v527_v5, %v523_v4  ;;  %v526_v13 = vld [vmem:[#allocation5 + $0xbb0] sm:$0xff] }
 0x13c   :  { %1892 = vmatpush1.bf16.msra.mxu0 %v1891_v24  ;;  %v1913_v23 = vpack.c.bf16 %v501_v18, %v497_v17  ;;  %v496_v24 = vld [vmem:[#allocation5 + $0xac0] sm:$0xff]  ;;  %v535_v17 = vld [vmem:[#allocation5 + $0xbf8] sm:$0xff] }
 0x13d   :  { %1894 = vmatprep.subr.bf16.mxu0 %v1893_v26  ;;  %v490_v26 = vld [vmem:[#allocation5 + $0xa90] sm:$0xff] }
 0x13e   :  { %2084 = vmatpush1.bf16.msra.mxu1 %v2083_v25  ;;  %v500_v25 = vld [vmem:[#allocation5 + $0xae0] sm:$0xff]  ;;  %v2107_v34 = vpack.c.bf16 %v494_v28, %v490_v26  ;;  %v1147_v26 = vld [vmem:[#allocation8 + $0x28] sm:$0xff]  ;;  %v539_v28 = vld [vmem:[#allocation5 + $0xc18] sm:$0xff] }
 0x13f   :  { %2086 = vmatprep.subr.bf16.mxu1 %v2085_v30  ;;  %v509_v30 = vld [vmem:[#allocation5 + $0xb28] sm:$0xff]  ;;  %v1915_v33 = vpack.c.bf16 %v500_v25, %v496_v24  ;;  %v2125_v24 = vpack.c.bf16 %v535_v17, %v531_v16  ;;  %v534_v25 = vld [vmem:[#allocation5 + $0xbf0] sm:$0xff] }
 0x140   :  { %1896 = vmatpush1.bf16.msra.mxu0 %v1895_v36  ;;  %v1917_v35 = vpack.c.bf16 %v509_v30, %v505_v29  ;;  %v504_v36 = vld [vmem:[#allocation5 + $0xb00] sm:$0xff]  ;;  %v543_v29 = vld [vmem:[#allocation5 + $0xc38] sm:$0xff]  ;;  %v149_v30 = vld [vmem:[#allocation2 + $0x20] sm:$0xff]  ;;  %v2127_v32 = vpack.c.bf16 %v534_v25, %v530_v20 }
 0x141   :  { %1898 = vmatprep.subr.bf16.mxu0 %v1897_v38  ;;  %v498_v38 = vld [vmem:[#allocation5 + $0xad0] sm:$0xff]  ;;  %v1174_v20 = vld [vmem:[#allocation8 + $0x100] sm:$0xff] }
 0x142   :  { %2088 = vmatpush1.bf16.msra.mxu1 %v2087_v37  ;;  %v508_v37 = vld [vmem:[#allocation5 + $0xb20] sm:$0xff]  ;;  %v2111_v46 = vpack.c.bf16 %v502_v40, %v498_v38  ;;  %v542_v38 = vld [vmem:[#allocation5 + $0xc30] sm:$0xff] }
 0x143   :  { %2090 = vmatprep.subr.bf16.mxu1 %v2089_v42  ;;  %v517_v42 = vld [vmem:[#allocation5 + $0xb68] sm:$0xff]  ;;  %v1919_v45 = vpack.c.bf16 %v508_v37, %v504_v36  ;;  %v2129_v36 = vpack.c.bf16 %v543_v29, %v539_v28  ;;  %v538_v37 = vld [vmem:[#allocation5 + $0xc10] sm:$0xff]  ;;  %v1153_v40 = vld [vmem:[#allocation8 + $0x58] sm:$0xff] }
 0x144   :  { %1900 = vmatpush1.bf16.msra.mxu0 %v1899_v48  ;;  %v1921_v47 = vpack.c.bf16 %v517_v42, %v513_v41  ;;  %v512_v48 = vld [vmem:[#allocation5 + $0xb40] sm:$0xff]  ;;  %v2131_v42 = vpack.c.bf16 %v542_v38, %v538_v37  ;;  %v1152_v44 = vld [vmem:[#allocation8 + $0x50] sm:$0xff]  ;;  %v1183_v28 = vld [vmem:[#allocation8 + $0x148] sm:$0xff] }
 0x145   :  { %1902 = vmatprep.subr.bf16.mxu0 %v1901_v50  ;;  %v506_v50 = vld [vmem:[#allocation5 + $0xb10] sm:$0xff]  ;;  %v1185_v29 = vld [vmem:[#allocation8 + $0x158] sm:$0xff]  ;;  %v1186_v38 = vld [vmem:[#allocation8 + $0x160] sm:$0xff] }
 0x146   :  { %2092 = vmatpush1.bf16.msra.mxu1 %v2091_v49  ;;  %v516_v49 = vld [vmem:[#allocation5 + $0xb60] sm:$0xff]  ;;  %v2115_v58 = vpack.c.bf16 %v510_v52, %v506_v50  ;;  %v1159_v52 = vld [vmem:[#allocation8 + $0x88] sm:$0xff] }
 0x147   :  { %2094 = vmatprep.subr.bf16.mxu1 %v2093_v54  ;;  %v525_v54 = vld [vmem:[#allocation5 + $0xba8] sm:$0xff]  ;;  %v1923_v57 = vpack.c.bf16 %v516_v49, %v512_v48  ;;  %v2143_v48 = vpack.c.bf16 %v1152_v44, %v1150_v43 }
 0x148   :  { %1904 = vmatpush1.bf16.msra.mxu0 %v1903_v60  ;;  %v1925_v59 = vpack.c.bf16 %v525_v54, %v521_v53  ;;  %v520_v60 = vld [vmem:[#allocation5 + $0xb80] sm:$0xff] }
 0x149   :  { %1906 = vmatprep.subr.bf16.mxu0 %v1905_v62  ;;  %v514_v62 = vld [vmem:[#allocation5 + $0xb50] sm:$0xff]  ;;  %v1154_v50 = vld [vmem:[#allocation8 + $0x60] sm:$0xff]  ;;  %v1161_v53 = vld [vmem:[#allocation8 + $0x98] sm:$0xff] }
 0x14a   :  { %2096 = vmatpush1.bf16.msra.mxu1 %v2095_v61  ;;  %v524_v61 = vld [vmem:[#allocation5 + $0xba0] sm:$0xff]  ;;  %v2119_v7 = vpack.c.bf16 %v518_v1, %v514_v62  ;;  %v2149_v55 = vpack.c.bf16 %v1161_v53, %v1159_v52  ;;  %v1164_v1 = vld [vmem:[#allocation8 + $0xb0] sm:$0xff]  ;;  %v1199_v53 = vld [vmem:[#allocation8 + $0x1c8] sm:$0xff] }
 0x14b   :  { %2098 = vmatprep.subr.bf16.mxu1 %v2097_v3  ;;  %v533_v3 = vld [vmem:[#allocation5 + $0xbe8] sm:$0xff]  ;;  %v1927_v6 = vpack.c.bf16 %v524_v61, %v520_v60  ;;  %v2356_v60 = vld [vmem:[#allocation2 + $0x30] sm:$0xff] }
 0x14c   :  { %1908 = vmatpush1.bf16.msra.mxu0 %v1907_v9  ;;  %v1929_v8 = vpack.c.bf16 %v533_v3, %v529_v2  ;;  %v528_v9 = vld [vmem:[#allocation5 + $0xbc0] sm:$0xff]  ;;  %v1167_v2 = vld [vmem:[#allocation8 + $0xc8] sm:$0xff] }
 0x14d   :  { %1910 = vmatprep.subr.bf16.mxu0 %v1909_v11  ;;  %v522_v11 = vld [vmem:[#allocation5 + $0xb90] sm:$0xff]  ;;  %v1169_v3 = vld [vmem:[#allocation8 + $0xd8] sm:$0xff]  ;;  %v1190_v44 = vld [vmem:[#allocation8 + $0x180] sm:$0xff] }
 0x14e   :  { %2100 = vmatpush1.bf16.msra.mxu1 %v2099_v10  ;;  %v532_v10 = vld [vmem:[#allocation5 + $0xbe0] sm:$0xff]  ;;  %v2123_v19 = vpack.c.bf16 %v526_v13, %v522_v11  ;;  %v2157_v5 = vpack.c.bf16 %v1169_v3, %v1167_v2  ;;  %v1172_v13 = vld [vmem:[#allocation8 + $0xf0] sm:$0xff]  ;;  %v1207_v2 = vld [vmem:[#allocation8 + $0x208] sm:$0xff] }
 0x14f   :  { %2102 = vmatprep.subr.bf16.mxu1 %v2101_v15  ;;  %v1145_v15 = vld [vmem:[#allocation8 + $0x18] sm:$0xff]  ;;  %v1931_v18 = vpack.c.bf16 %v532_v10, %v528_v9 }
 0x150   :  { %1912 = vmatpush1.bf16.msra.mxu0 %v1911_v21  ;;  %v2133_v21 = vpack.c.bf16 %v1145_v15, %v1143_v14  ;;  %v1173_v9 = vld [vmem:[#allocation8 + $0xf8] sm:$0xff]  ;;  %v1175_v14 = vld [vmem:[#allocation8 + $0x108] sm:$0xff] }
 0x151   :  { %1914 = vmatprep.subr.bf16.mxu0 %v1913_v23  ;;  %v1144_v23 = vld [vmem:[#allocation8 + $0x10] sm:$0xff]  ;;  %v1177_v15 = vld [vmem:[#allocation8 + $0x118] sm:$0xff] }
 0x152   :  { %2104 = vmatpush1.bf16.msra.mxu1 %v2103_v22  ;;  %v1142_v22 = vld [vmem:[#allocation8] sm:$0xff]  ;;  %v1209_v3 = vld [vmem:[#allocation8 + $0x218] sm:$0xff] }
 0x153   :  { %2106 = vmatprep.subr.bf16.mxu1 %v2105_v27  ;;  %v1149_v27 = vld [vmem:[#allocation8 + $0x38] sm:$0xff]  ;;  %v2135_v31 = vpack.c.bf16 %v1144_v23, %v1142_v22  ;;  %v1179_v22 = vld [vmem:[#allocation8 + $0x128] sm:$0xff] }
 0x154   :  { %1916 = vmatpush1.bf16.msra.mxu0 %v1915_v33  ;;  %v2137_v33 = vpack.c.bf16 %v1149_v27, %v1147_v26  ;;  %v1181_v23 = vld [vmem:[#allocation8 + $0x138] sm:$0xff]  ;;  %v1178_v26 = vld [vmem:[#allocation8 + $0x120] sm:$0xff]  ;;  %v1180_v27 = vld [vmem:[#allocation8 + $0x130] sm:$0xff] }
 0x155   :  { %1918 = vmatprep.subr.bf16.mxu0 %v1917_v35  ;;  %v1148_v35 = vld [vmem:[#allocation8 + $0x30] sm:$0xff]  ;;  %v2169_v25 = vpack.c.bf16 %v1181_v23, %v1179_v22  ;;  %v1430_v22 = vld [vmem:[#allocation11 + $0x20] sm:$0xff] }
 0x156   :  { %2108 = vmatpush1.bf16.msra.mxu1 %v2107_v34  ;;  %v1146_v34 = vld [vmem:[#allocation8 + $0x20] sm:$0xff]  ;;  %v1431_v23 = vld [vmem:[#allocation11 + $0x28] sm:$0xff] }
 0x157   :  { %2110 = vmatprep.subr.bf16.mxu1 %v2109_v39  ;;  %v1151_v39 = vld [vmem:[#allocation8 + $0x48] sm:$0xff]  ;;  %v2139_v41 = vpack.c.bf16 %v1148_v35, %v1146_v34  ;;  %v1189_v35 = vld [vmem:[#allocation8 + $0x178] sm:$0xff] }
 0x158   :  { %1920 = vmatpush1.bf16.msra.mxu0 %v1919_v45  ;;  %v2141_v45 = vpack.c.bf16 %v1153_v40, %v1151_v39  ;;  %v1187_v34 = vld [vmem:[#allocation8 + $0x168] sm:$0xff]  ;;  %v1188_v39 = vld [vmem:[#allocation8 + $0x170] sm:$0xff] }
 0x159   :  { %1922 = vmatprep.subr.bf16.mxu0 %v1921_v47  ;;  %v1157_v47 = vld [vmem:[#allocation8 + $0x78] sm:$0xff]  ;;  %v2177_v37 = vpack.c.bf16 %v1189_v35, %v1187_v34  ;;  %v1191_v40 = vld [vmem:[#allocation8 + $0x188] sm:$0xff] }
 0x15a   :  { %2112 = vmatpush1.bf16.msra.mxu1 %v2111_v46  ;;  %v1155_v46 = vld [vmem:[#allocation8 + $0x68] sm:$0xff] }
 0x15b   :  { %2114 = vmatprep.subr.bf16.mxu1 %v2113_v51  ;;  %v2145_v49 = vpack.c.bf16 %v1157_v47, %v1155_v46  ;;  %v1156_v51 = vld [vmem:[#allocation8 + $0x70] sm:$0xff]  ;;  %v1195_v46 = vld [vmem:[#allocation8 + $0x1a8] sm:$0xff]  ;;  %v1197_v47 = vld [vmem:[#allocation8 + $0x1b8] sm:$0xff] }
 0x15c   :  { %1924 = vmatpush1.bf16.msra.mxu0 %v1923_v57  ;;  %v2147_v54 = vpack.c.bf16 %v1156_v51, %v1154_v50  ;;  %v1160_v57 = vld [vmem:[#allocation8 + $0x90] sm:$0xff]  ;;  %v1194_v50 = vld [vmem:[#allocation8 + $0x1a0] sm:$0xff] }
 0x15d   :  { %1926 = vmatprep.subr.bf16.mxu0 %v1925_v59  ;;  %v1165_v59 = vld [vmem:[#allocation8 + $0xb8] sm:$0xff]  ;;  %v2151_v61 = vpack.c.bf16 %v1160_v57, %v1158_v56  ;;  %v1196_v51 = vld [vmem:[#allocation8 + $0x1b0] sm:$0xff]  ;;  %v1198_v56 = vld [vmem:[#allocation8 + $0x1c0] sm:$0xff] }
 0x15e   :  { %2116 = vmatpush1.bf16.msra.mxu1 %v2115_v58  ;;  %v1163_v58 = vld [vmem:[#allocation8 + $0xa8] sm:$0xff]  ;;  %v2187_v52 = vpack.c.bf16 %v1196_v51, %v1194_v50  ;;  %v1200_v57 = vld [vmem:[#allocation8 + $0x1d0] sm:$0xff] }
 0x15f   :  { %2118 = vmatprep.subr.bf16.mxu1 %v2117_v63  ;;  %v2153_v62 = vpack.c.bf16 %v1165_v59, %v1163_v58  ;;  %v1162_v63 = vld [vmem:[#allocation8 + $0xa0] sm:$0xff]  ;;  %v2191_v58 = vpack.c.bf16 %v1200_v57, %v1198_v56  ;;  %v1203_v59 = vld [vmem:[#allocation8 + $0x1e8] sm:$0xff] }
 0x160   :  { %1928 = vmatpush1.bf16.msra.mxu0 %v1927_v6  ;;  %v2155_v4 = vpack.c.bf16 %v1164_v1, %v1162_v63  ;;  %v1166_v6 = vld [vmem:[#allocation8 + $0xc0] sm:$0xff]  ;;  %v1204_v63 = vld [vmem:[#allocation8 + $0x1f0] sm:$0xff] }
 0x161   :  { %1930 = vmatprep.subr.bf16.mxu0 %v1929_v8  ;;  %v1171_v8 = vld [vmem:[#allocation8 + $0xe8] sm:$0xff] }
 0x162   :  { %2120 = vmatpush1.bf16.msra.mxu1 %v2119_v7  ;;  %v1168_v7 = vld [vmem:[#allocation8 + $0xd0] sm:$0xff]  ;;  %v2161_v11 = vpack.c.bf16 %v1173_v9, %v1171_v8  ;;  %v1434_v34 = vld [vmem:[#allocation11 + $0x40] sm:$0xff] }
 0x163   :  { %2122 = vmatprep.subr.bf16.mxu1 %v2121_v12  ;;  %v2159_v10 = vpack.c.bf16 %v1168_v7, %v1166_v6  ;;  %v1170_v12 = vld [vmem:[#allocation8 + $0xe0] sm:$0xff]  ;;  %v1443_v6 = vld [vmem:[#allocation11 + $0x88] sm:$0xff] }
 0x164   :  { %1932 = vmatpush1.bf16.msra.mxu0 %v1931_v18  ;;  %v2163_v18 = vpack.c.bf16 %v1172_v13, %v1170_v12  ;;  %v1426_v7 = vld [vmem:[#allocation11] sm:$0xff]  ;;  %v1427_v9 = vld [vmem:[#allocation11 + $0x8] sm:$0xff] }
 0x165   :  { %2134 = vmatprep.subr.bf16.mxu0 %v2133_v21  ;;  %v1176_v21 = vld [vmem:[#allocation8 + $0x110] sm:$0xff]  ;;  %v2263_v12 = vpack.c.bf16 %v1427_v9, %v1426_v7  ;;  %v1215_v7 = vld [vmem:[#allocation8 + $0x248] sm:$0xff] }
 0x166   :  { %2124 = vmatpush1.bf16.msra.mxu1 %v2123_v19  ;;  %v2165_v19 = vpack.c.bf16 %v1177_v15, %v1175_v14  ;;  %v1428_v14 = vld [vmem:[#allocation11 + $0x10] sm:$0xff]  ;;  %v1429_v15 = vld [vmem:[#allocation11 + $0x18] sm:$0xff]  ;;  %v1435_v35 = vld [vmem:[#allocation11 + $0x48] sm:$0xff] }
 0x167   :  { %2126 = vmatprep.subr.bf16.mxu1 %v2125_v24  ;;  %777 = vmatmul.mubr.f32.vlgmr.msra.gmra.mrb[0].mxu0 %v149_v30  ;;  %v2167_v24 = vpack.c.bf16 %v1176_v21, %v1174_v20  ;;  %v2267_v20 = vpack.c.bf16 %v1429_v15, %v1428_v14 }
 0x168   :  { %2136 = vmatpush1.bf16.msra.mxu0 %v2135_v31  ;;  %v2173_v31 = vpack.c.bf16 %v1185_v29, %v1183_v28  ;;  %v1432_v28 = vld [vmem:[#allocation11 + $0x30] sm:$0xff]  ;;  %v1433_v29 = vld [vmem:[#allocation11 + $0x38] sm:$0xff] }
 0x169   :  { %2138 = vmatprep.subr.bf16.mxu0 %v2137_v33  ;;  %v1184_v33 = vld [vmem:[#allocation8 + $0x150] sm:$0xff] }
 0x16a   :  { %2128 = vmatpush1.bf16.msra.mxu1 %v2127_v32  ;;  %v1182_v32 = vld [vmem:[#allocation8 + $0x140] sm:$0xff] }
 0x16b   :  { %2130 = vmatprep.subr.bf16.mxu1 %v2129_v36  ;;  %v2175_v36 = vpack.c.bf16 %v1184_v33, %v1182_v32  ;;  %v2275_v32 = vpack.c.bf16 %v1433_v29, %v1432_v28  ;;  %v1222_v28 = vld [vmem:[#allocation8 + $0x280] sm:$0xff]  ;;  %v1224_v29 = vld [vmem:[#allocation8 + $0x290] sm:$0xff] }
 0x16c   :  { %2140 = vmatpush1.bf16.msra.mxu0 %v2139_v41  ;;  %v1193_v41 = vld [vmem:[#allocation8 + $0x198] sm:$0xff] }
 0x16d   :  { %1061 = vmatmul.mubr.f32.vlgmr.msra.gmra.mrb[2].mxu1 %v149_v30  ;;  %2142 = vmatprep.subr.bf16.mxu0 %v2141_v45  ;;  %v2171_v30 = vpack.c.bf16 %v1180_v27, %v1178_v26  ;;  %v2181_v43 = vpack.c.bf16 %v1193_v41, %v1191_v40  ;;  %v1192_v45 = vld [vmem:[#allocation8 + $0x190] sm:$0xff]  ;;  %v2271_v26 = vpack.c.bf16 %v1431_v23, %v1430_v22  ;;  %v1437_v41 = vld [vmem:[#allocation11 + $0x58] sm:$0xff]  ;;  %v1223_v23 = vld [vmem:[#allocation8 + $0x288] sm:$0xff] }
 0x16e   :  { %2132 = vmatpush1.bf16.msra.mxu1 %v2131_v42  ;;  %1131 = vmatprep.mubr.f32.mxu1 %v2604_v0  ;;  %v2179_v42 = vpack.c.bf16 %v1188_v39, %v1186_v38  ;;  %v2279_v38 = vpack.c.bf16 %v1435_v35, %v1434_v34  ;;  %v1436_v40 = vld [vmem:[#allocation11 + $0x50] sm:$0xff]  ;;  %v1226_v34 = vld [vmem:[#allocation8 + $0x2a0] sm:$0xff] }
 0x16f   :  { %v1220_v22 = vld [vmem:[#allocation8 + $0x270] sm:$0xff] }
 0x170   :  { %2144 = vmatpush1.bf16.msra.mxu0 %v2143_v48  ;;  %v2183_v48 = vpack.c.bf16 %v1192_v45, %v1190_v44  ;;  %v2283_v44 = vpack.c.bf16 %v1437_v41, %v1436_v40  ;;  %v1228_v35 = vld [vmem:[#allocation8 + $0x2b0] sm:$0xff]  ;;  %v1230_v40 = vld [vmem:[#allocation8 + $0x2c0] sm:$0xff] }
 0x171   :  { %2146 = vmatprep.subr.bf16.mxu0 %v2145_v49  ;;  %v2185_v49 = vpack.c.bf16 %v1197_v47, %v1195_v46  ;;  %v546_v46 = vlaneseq  ;;  %v1232_v41 = vld [vmem:[#allocation8 + $0x2d0] sm:$0xff] }
 0x173   :  { %v2774_v47 = vshrl.u32 %v546_v46, 7  ;;  %v1234_v46 = vld [vmem:[#allocation8 + $0x2e0] sm:$0xff] }
 0x174   :  { %2148 = vmatpush1.bf16.msra.mxu0 %v2147_v54  ;;  %v1201_v54 = vld [vmem:[#allocation8 + $0x1d8] sm:$0xff] }
 0x175   :  { %1651 = vmatmul.mubr.msk.f32.vlgmr.msra.gmra.mrb[2].mxu1 %vm566_vm0, %v2356_v60  ;;  %2150 = vmatprep.subr.bf16.mxu0 %v2149_v55  ;;  %v2189_v55 = vpack.c.bf16 %v1201_v54, %v1199_v53  ;;  %v1205_v60 = vld [vmem:[#allocation8 + $0x1f8] sm:$0xff]  ;;  %v552_v50 = vsub.s32 1, %v2774_v47 }
 0x178   :  { %2152 = vmatpush1.bf16.msra.mxu0 %v2151_v61  ;;  %v2193_v61 = vpack.c.bf16 %v1205_v60, %v1203_v59  ;;  %v1208_v59 = vld [vmem:[#allocation8 + $0x210] sm:$0xff] }
 0x179   :  { %2154 = vmatprep.subr.bf16.mxu0 %v2153_v62  ;;  %v1202_v62 = vld [vmem:[#allocation8 + $0x1e0] sm:$0xff] }
 0x17a   :  { %v2195_v1 = vpack.c.bf16 %v1204_v63, %v1202_v62  ;;  %v1213_v62 = vld [vmem:[#allocation8 + $0x238] sm:$0xff] }
 0x17c   :  { %2156 = vmatpush1.bf16.msra.mxu0 %v2155_v4  ;;  %v2197_v4 = vpack.c.bf16 %v1209_v3, %v1207_v2 }
 0x17d   :  { %2158 = vmatprep.subr.bf16.mxu0 %v2157_v5  ;;  %v1442_v5 = vld [vmem:[#allocation11 + $0x80] sm:$0xff] }
 0x17e   :  { %v2261_v8 = vpack.c.bf16 %v1443_v6, %v1442_v5  ;;  %v1210_v5 = vld [vmem:[#allocation8 + $0x220] sm:$0xff]  ;;  %v1212_v6 = vld [vmem:[#allocation8 + $0x230] sm:$0xff] }
 0x180   :  { %v2770_v16 = vpop.f32.mrb[0].mxu1  ;;  %2160 = vmatpush1.bf16.msra.mxu0 %v2159_v10  ;;  %v1444_v10 = vld [vmem:[#allocation11 + $0x90] sm:$0xff]  ;;  %2262 = vmatprep.subr.bf16.mxu1 %v2261_v8 }
 0x181   :  { %v2772_v17 = vpop.f32.mrb[1].mxu1  ;;  %2162 = vmatprep.subr.bf16.mxu0 %v2161_v11  ;;  %v1445_v11 = vld [vmem:[#allocation11 + $0x98] sm:$0xff]  ;;  %2264 = vmatpush3.bf16.msra.mxu1 %v2263_v12  ;;  %v1219_v12 = vld [vmem:[#allocation8 + $0x268] sm:$0xff] }
 0x182   :  { %v2265_v13 = vpack.c.bf16 %v1445_v11, %v1444_v10  ;;  %v1217_v8 = vld [vmem:[#allocation8 + $0x258] sm:$0xff]  ;;  %v1214_v10 = vld [vmem:[#allocation8 + $0x240] sm:$0xff]  ;;  %v1216_v11 = vld [vmem:[#allocation8 + $0x250] sm:$0xff] }
 0x184   :  { %2164 = vmatpush1.bf16.msra.mxu0 %v2163_v18  ;;  %v1446_v18 = vld [vmem:[#allocation11 + $0xa0] sm:$0xff]  ;;  %2266 = vmatprep.subr.bf16.mxu1 %v2265_v13  ;;  %v1221_v13 = vld [vmem:[#allocation8 + $0x278] sm:$0xff] }
 0x185   :  { %2166 = vmatprep.subr.bf16.mxu0 %v2165_v19  ;;  %v1447_v19 = vld [vmem:[#allocation11 + $0xa8] sm:$0xff]  ;;  %2268 = vmatpush3.bf16.msra.mxu1 %v2267_v20  ;;  %v2209_v20 = vpack.c.bf16 %v1221_v13, %v1219_v12  ;;  %v1257_v12 = vld [vmem:[#allocation8 + $0x398] sm:$0xff] }
 0x186   :  { %v2269_v21 = vpack.c.bf16 %v1447_v19, %v1446_v18  ;;  %v2207_v18 = vpack.c.bf16 %v1216_v11, %v1214_v10  ;;  %v1252_v10 = vld [vmem:[#allocation8 + $0x370] sm:$0xff]  ;;  %v1255_v11 = vld [vmem:[#allocation8 + $0x388] sm:$0xff] }
 0x188   :  { %2168 = vmatpush1.bf16.msra.mxu0 %v2167_v24  ;;  %v1448_v24 = vld [vmem:[#allocation11 + $0xb0] sm:$0xff]  ;;  %2270 = vmatprep.subr.bf16.mxu1 %v2269_v21  ;;  %v1218_v21 = vld [vmem:[#allocation8 + $0x260] sm:$0xff] }
 0x189   :  { %2170 = vmatprep.subr.bf16.mxu0 %v2169_v25  ;;  %v1449_v25 = vld [vmem:[#allocation11 + $0xb8] sm:$0xff]  ;;  %2272 = vmatpush3.bf16.msra.mxu1 %v2271_v26  ;;  %v2211_v26 = vpack.c.bf16 %v1220_v22, %v1218_v21 }
 0x18a   :  { %v2273_v27 = vpack.c.bf16 %v1449_v25, %v1448_v24  ;;  %v1225_v24 = vld [vmem:[#allocation8 + $0x298] sm:$0xff] }
 0x18b   :  { %v1261_v21 = vld [vmem:[#allocation8 + $0x3b8] sm:$0xff] }
 0x18c   :  { %2172 = vmatpush1.bf16.msra.mxu0 %v2171_v30  ;;  %v1450_v30 = vld [vmem:[#allocation11 + $0xc0] sm:$0xff]  ;;  %2274 = vmatprep.subr.bf16.mxu1 %v2273_v27  ;;  %v2213_v27 = vpack.c.bf16 %v1225_v24, %v1223_v23 }
 0x18d   :  { %2174 = vmatprep.subr.bf16.mxu0 %v2173_v31  ;;  %v1451_v31 = vld [vmem:[#allocation11 + $0xc8] sm:$0xff]  ;;  %2276 = vmatpush3.bf16.msra.mxu1 %v2275_v32  ;;  %v2215_v32 = vpack.c.bf16 %v1224_v29, %v1222_v28  ;;  %v1258_v24 = vld [vmem:[#allocation8 + $0x3a0] sm:$0xff]  ;;  %v556_v29 = vsub.s32 2, %v2774_v47 }
 0x18e   :  { %v2277_v33 = vpack.c.bf16 %v1451_v31, %v1450_v30  ;;  %v1227_v30 = vld [vmem:[#allocation8 + $0x2a8] sm:$0xff]  ;;  %v1229_v31 = vld [vmem:[#allocation8 + $0x2b8] sm:$0xff] }
 0x190   :  { %2176 = vmatpush1.bf16.msra.mxu0 %v2175_v36  ;;  %v1452_v36 = vld [vmem:[#allocation11 + $0xd0] sm:$0xff]  ;;  %2278 = vmatprep.subr.bf16.mxu1 %v2277_v33  ;;  %v2217_v33 = vpack.c.bf16 %v1229_v31, %v1227_v30  ;;  %v1262_v31 = vld [vmem:[#allocation8 + $0x3c0] sm:$0xff] }
 0x191   :  { %2178 = vmatprep.subr.bf16.mxu0 %v2177_v37  ;;  %v1453_v37 = vld [vmem:[#allocation11 + $0xd8] sm:$0xff]  ;;  %2280 = vmatpush3.bf16.msra.mxu1 %v2279_v38  ;;  %v2219_v38 = vpack.c.bf16 %v1228_v35, %v1226_v34 }
 0x192   :  { %v2281_v39 = vpack.c.bf16 %v1453_v37, %v1452_v36  ;;  %v1231_v36 = vld [vmem:[#allocation8 + $0x2c8] sm:$0xff]  ;;  %v1233_v37 = vld [vmem:[#allocation8 + $0x2d8] sm:$0xff] }
 0x193   :  { %v1269_v34 = vld [vmem:[#allocation8 + $0x3f8] sm:$0xff] }
 0x194   :  { %2180 = vmatpush1.bf16.msra.mxu0 %v2179_v42  ;;  %v1454_v42 = vld [vmem:[#allocation11 + $0xe0] sm:$0xff]  ;;  %2282 = vmatprep.subr.bf16.mxu1 %v2281_v39  ;;  %v2221_v39 = vpack.c.bf16 %v1233_v37, %v1231_v36 }
 0x195   :  { %2182 = vmatprep.subr.bf16.mxu0 %v2181_v43  ;;  %v1455_v43 = vld [vmem:[#allocation11 + $0xe8] sm:$0xff]  ;;  %2284 = vmatpush3.bf16.msra.mxu1 %v2283_v44  ;;  %v2223_v44 = vpack.c.bf16 %v1232_v41, %v1230_v40 }
 0x196   :  { %v2285_v45 = vpack.c.bf16 %v1455_v43, %v1454_v42  ;;  %v1235_v42 = vld [vmem:[#allocation8 + $0x2e8] sm:$0xff]  ;;  %v1237_v43 = vld [vmem:[#allocation8 + $0x2f8] sm:$0xff] }
 0x198   :  { %2184 = vmatpush1.bf16.msra.mxu0 %v2183_v48  ;;  %2286 = vmatprep.subr.bf16.mxu1 %v2285_v45  ;;  %v548_v48 = vsub.s32 0, %v2774_v47  ;;  %v2225_v45 = vpack.c.bf16 %v1237_v43, %v1235_v42  ;;  %v1438_v43 = vld [vmem:[#allocation11 + $0x60] sm:$0xff] }
 0x199   :  { %2186 = vmatprep.subr.bf16.mxu0 %v2185_v49  ;;  %v2777_v49 = vld [vmem:[#allocation7] sm:$0xf] }
 0x19a   :  { %v549_v51 = vrot.slane %v2777_v49, %v548_v48  ;;  %v557_v36 = vrot.slane %v2777_v49, %v556_v29  ;;  %v1653_v29 = vld [vmem:[#allocation16] ss:$0 sm:$0xff] }
 0x19c   :  { %2188 = vmatpush1.bf16.msra.mxu0 %v2187_v52  ;;  %v553_v52 = vrot.slane %v2777_v49, %v552_v50 }
 0x19d   :  { %2190 = vmatprep.subr.bf16.mxu0 %v2189_v55 }
 0x1a0   :  { %2192 = vmatpush1.bf16.msra.mxu0 %v2191_v58  ;;  %v1206_v58 = vld [vmem:[#allocation8 + $0x200] sm:$0xff] }
 0x1a1   :  { %2194 = vmatprep.subr.bf16.mxu0 %v2193_v61  ;;  %v1211_v61 = vld [vmem:[#allocation8 + $0x228] sm:$0xff] }
 0x1a2   :  { %v2201_v3 = vpack.c.bf16 %v1213_v62, %v1211_v61  ;;  %v1242_v62 = vld [vmem:[#allocation8 + $0x320] sm:$0xff] }
 0x1a4   :  { %2196 = vmatpush1.bf16.msra.mxu0 %v2195_v1  ;;  %v2199_v1 = vpack.c.bf16 %v1208_v59, %v1206_v58  ;;  %v1243_v58 = vld [vmem:[#allocation8 + $0x328] sm:$0xff]  ;;  %v1245_v59 = vld [vmem:[#allocation8 + $0x338] sm:$0xff] }
 0x1a5   :  { %2198 = vmatprep.subr.bf16.mxu0 %v2197_v4  ;;  %v560_v4 = vsub.s32 3, %v2774_v47  ;;  %v2233_v61 = vpack.c.bf16 %v1245_v59, %v1243_v58 }
 0x1a7   :  { %v561_v9 = vrot.slane %v2777_v49, %v560_v4  ;;  %v1440_v49 = vld [vmem:[#allocation11 + $0x70] sm:$0xff] }
 0x23a   :  { %v778_v53 = vpop.f32.mrb[0].mxu0 }
 0x23b   :  { %v2317_v54 = vadd.f32 %v778_v53, %v549_v51  ;;  %v780_v55 = vpop.f32.mrb[1].mxu0  ;;  %v1236_v51 = vld [vmem:[#allocation8 + $0x2f0] sm:$0xff]  ;;  %v1241_v53 = vld [vmem:[#allocation8 + $0x318] sm:$0xff] }
 0x23c   :  { %v2319_v56 = vadd.f32 %v780_v55, %v553_v52  ;;  %v1239_v52 = vld [vmem:[#allocation8 + $0x308] sm:$0xff] }
 0x23d   :  { %v2318_v57 = vadd.f32 %v2317_v54, %v2770_v16  ;;  %v2203_v16 = vpack.c.bf16 %v1212_v6, %v1210_v5  ;;  %v2227_v54 = vpack.c.bf16 %v1236_v51, %v1234_v46  ;;  %v2229_v55 = vpack.c.bf16 %v1241_v53, %v1239_v52  ;;  %v1246_v5 = vld [vmem:[#allocation8 + $0x340] sm:$0xff]  ;;  %v1248_v6 = vld [vmem:[#allocation8 + $0x350] sm:$0xff] }
 0x23e   :  { %v2320_v60 = vadd.f32 %v2319_v56, %v2772_v17  ;;  %v2205_v17 = vpack.c.bf16 %v1217_v8, %v1215_v7  ;;  %v1238_v56 = vld [vmem:[#allocation8 + $0x300] sm:$0xff]  ;;  %v1251_v7 = vld [vmem:[#allocation8 + $0x368] sm:$0xff]  ;;  %v1253_v8 = vld [vmem:[#allocation8 + $0x378] sm:$0xff] }
 0x23f   :  { %v1138_v2 = vmax.f32 %v2318_v57, 0.0  ;;  %v1240_v57 = vld [vmem:[#allocation8 + $0x310] sm:$0xff]  ;;  %v1457_v51 = vld [vmem:[#allocation11 + $0xf8] sm:$0xff] }
 0x240   :  { %v1139_v63 = vmax.f32 %v2320_v60, 0.0  ;;  %v2231_v60 = vpack.c.bf16 %v1240_v57, %v1238_v56  ;;  %v1456_v46 = vld [vmem:[#allocation11 + $0xf0] sm:$0xff]  ;;  %v1441_v53 = vld [vmem:[#allocation11 + $0x78] sm:$0xff] }
 0x241   :  { %v2289_v52 = vpack.c.bf16 %v1457_v51, %v1456_v46  ;;  %v1270_v56 = vld [vmem:[#allocation10] sm:$0x3] }
 0x242   :  { %1346 = vmatprep.mubr.f32.mxu0 %v1139_v63  ;;  %v1244_v63 = vld [vmem:[#allocation8 + $0x330] sm:$0xff]  ;;  %v1279_v57 = vrot.slane %v1270_v56, %v552_v50 }
 0x243   :  { %1347 = vmatmul.mubr.f32.vlgmr.msra.gmra.mrb[2].mxu0 %v1138_v2  ;;  %v1249_v2 = vld [vmem:[#allocation8 + $0x358] sm:$0xff] }
 0x244   :  { %2200 = vmatpush1.bf16.msra.mxu0 %v2199_v1  ;;  %v1247_v1 = vld [vmem:[#allocation8 + $0x348] sm:$0xff]  ;;  %v1542_v50 = vld [vmem:[#allocation14 + $0x30] sm:$0xff] }
 0x245   :  { %2202 = vmatprep.subr.bf16.mxu0 %v2201_v3  ;;  %v2235_v3 = vpack.c.bf16 %v1244_v63, %v1242_v62  ;;  %v2237_v4 = vpack.c.bf16 %v1249_v2, %v1247_v1  ;;  %v1537_v62 = vld [vmem:[#allocation14 + $0x8] sm:$0xff] }
 0x248   :  { %v2790_v14 = vpop.f32.mrb[2].mxu1  ;;  %2204 = vmatpush1.bf16.msra.mxu0 %v2203_v16  ;;  %v2239_v16 = vpack.c.bf16 %v1248_v6, %v1246_v5  ;;  %v1539_v5 = vld [vmem:[#allocation14 + $0x18] sm:$0xff] }
 0x249   :  { %v1135_v15 = vpop.f32.mrb[3].mxu1  ;;  %2206 = vmatprep.subr.bf16.mxu0 %v2205_v17  ;;  %v1250_v17 = vld [vmem:[#allocation8 + $0x360] sm:$0xff]  ;;  %v2321_v41 = vadd.f32 %v2790_v14, %v557_v36  ;;  %v1275_v14 = vrot.slane %v1270_v56, %v548_v48 }
 0x24a   :  { %v2322_v19 = vadd.f32 %v1135_v15, %v561_v9  ;;  %v2241_v9 = vpack.c.bf16 %v1253_v8, %v1251_v7  ;;  %v2243_v13 = vpack.c.bf16 %v1252_v10, %v1250_v17  ;;  %v2245_v15 = vpack.c.bf16 %v1257_v12, %v1255_v11  ;;  %v1540_v48 = vld [vmem:[#allocation14 + $0x20] sm:$0xff]  ;;  %v1541_v7 = vld [vmem:[#allocation14 + $0x28] sm:$0xff]  ;;  %v1543_v8 = vld [vmem:[#allocation14 + $0x38] sm:$0xff] }
 0x24b   :  { %v1140_v42 = vmax.f32 %v2321_v41, 0.0  ;;  %v2300_v47 = vpack.c.bf16 %v1541_v7, %v1540_v48  ;;  %v1545_v17 = vld [vmem:[#allocation14 + $0x48] sm:$0xff]  ;;  %v1546_v11 = vld [vmem:[#allocation14 + $0x50] sm:$0xff]  ;;  %v1547_v12 = vld [vmem:[#allocation14 + $0x58] sm:$0xff] }
 0x24c   :  { %v1141_v25 = vmax.f32 %v2322_v19, 0.0  ;;  %2208 = vmatpush1.bf16.msra.mxu0 %v2207_v18  ;;  %v1254_v18 = vld [vmem:[#allocation8 + $0x380] sm:$0xff]  ;;  %v1256_v19 = vld [vmem:[#allocation8 + $0x390] sm:$0xff] }
 0x24d   :  { %2210 = vmatprep.subr.bf16.mxu0 %v2209_v20  ;;  %v1259_v20 = vld [vmem:[#allocation8 + $0x3a8] sm:$0xff]  ;;  %v2247_v22 = vpack.c.bf16 %v1256_v19, %v1254_v18 }
 0x24e   :  { %1417 = vmatprep.mubr.f32.mxu0 %v1141_v25  ;;  %v2249_v23 = vpack.c.bf16 %v1261_v21, %v1259_v20  ;;  %v1260_v25 = vld [vmem:[#allocation8 + $0x3b0] sm:$0xff]  ;;  %v1551_v21 = vld [vmem:[#allocation14 + $0x78] sm:$0xff] }
 0x24f   :  { %v2251_v28 = vpack.c.bf16 %v1260_v25, %v1258_v24  ;;  %v1549_v18 = vld [vmem:[#allocation14 + $0x68] sm:$0xff]  ;;  %v1550_v20 = vld [vmem:[#allocation14 + $0x70] sm:$0xff]  ;;  %v1652_v24 = vld [vmem:[#allocation13] ss:$0 sm:$0xff] }
 0x250   :  { %2212 = vmatpush1.bf16.msra.mxu0 %v2211_v26  ;;  %v1263_v26 = vld [vmem:[#allocation8 + $0x3c8] sm:$0xff] }
 0x251   :  { %2214 = vmatprep.subr.bf16.mxu0 %v2213_v27  ;;  %v1265_v27 = vld [vmem:[#allocation8 + $0x3d8] sm:$0xff] }
 0x252   :  { %v2253_v30 = vpack.c.bf16 %v1265_v27, %v1263_v26 }
 0x254   :  { %2216 = vmatpush1.bf16.msra.mxu0 %v2215_v32  ;;  %v1264_v32 = vld [vmem:[#allocation8 + $0x3d0] sm:$0xff] }
 0x255   :  { %2218 = vmatprep.subr.bf16.mxu0 %v2217_v33  ;;  %v1267_v33 = vld [vmem:[#allocation8 + $0x3e8] sm:$0xff]  ;;  %v2255_v35 = vpack.c.bf16 %v1264_v32, %v1262_v31 }
 0x256   :  { %v2257_v37 = vpack.c.bf16 %v1269_v34, %v1267_v33 }
 0x258   :  { %2220 = vmatpush1.bf16.msra.mxu0 %v2219_v38  ;;  %v1266_v38 = vld [vmem:[#allocation8 + $0x3e0] sm:$0xff] }
 0x259   :  { %2222 = vmatprep.subr.bf16.mxu0 %v2221_v39  ;;  %v1268_v39 = vld [vmem:[#allocation8 + $0x3f0] sm:$0xff] }
 0x25a   :  { %v2259_v40 = vpack.c.bf16 %v1268_v39, %v1266_v38 }
 0x25c   :  { %2224 = vmatpush1.bf16.msra.mxu0 %v2223_v44  ;;  %v1439_v44 = vld [vmem:[#allocation11 + $0x68] sm:$0xff] }
 0x25d   :  { %2226 = vmatprep.subr.bf16.mxu0 %v2225_v45  ;;  %v2287_v45 = vpack.c.bf16 %v1439_v44, %v1438_v43 }
 0x25f   :  { %2288 = vmatpush3.bf16.msra.mxu1 %v2287_v45 }
 0x260   :  { %2228 = vmatpush1.bf16.msra.mxu0 %v2227_v54  ;;  %v2291_v54 = vpack.c.bf16 %v1441_v53, %v1440_v49  ;;  %2290 = vmatprep.subr.bf16.mxu1 %v2289_v52 }
 0x261   :  { %2230 = vmatprep.subr.bf16.mxu0 %v2229_v55  ;;  %v2605_v55 = vmov 0.0|0.0  }
 0x263   :  { %2292 = vmatpush3.bf16.msra.mxu1 %v2291_v54 }
 0x264   :  { %2232 = vmatpush1.bf16.msra.mxu0 %v2231_v60  ;;  %2293 = vmatprep.subr.bf16.mxu1 %v2605_v55 }
 0x265   :  { %2234 = vmatprep.subr.bf16.mxu0 %v2233_v61  ;;  %v1536_v61 = vld [vmem:[#allocation14] sm:$0xff] }
 0x266   :  { %v2294_v2 = vpack.c.bf16 %v1537_v62, %v1536_v61 }
 0x268   :  { %2236 = vmatpush1.bf16.msra.mxu0 %v2235_v3 }
 0x269   :  { %2238 = vmatprep.subr.bf16.mxu0 %v2237_v4  ;;  %v1538_v4 = vld [vmem:[#allocation14 + $0x10] sm:$0xff] }
 0x26a   :  { %v2297_v6 = vpack.c.bf16 %v1539_v5, %v1538_v4 }
 0x26c   :  { %2240 = vmatpush1.bf16.msra.mxu0 %v2239_v16  ;;  %v2303_v16 = vpack.c.bf16 %v1543_v8, %v1542_v50 }
 0x26d   :  { %2242 = vmatprep.subr.bf16.mxu0 %v2241_v9  ;;  %v1544_v9 = vld [vmem:[#allocation14 + $0x40] sm:$0xff] }
 0x26e   :  { %v2306_v10 = vpack.c.bf16 %v1545_v17, %v1544_v9 }
 0x270   :  { %2244 = vmatpush1.bf16.msra.mxu0 %v2243_v13  ;;  %v2309_v13 = vpack.c.bf16 %v1547_v12, %v1546_v11 }
 0x271   :  { %2246 = vmatprep.subr.bf16.mxu0 %v2245_v15  ;;  %v1548_v15 = vld [vmem:[#allocation14 + $0x60] sm:$0xff] }
 0x272   :  { %v2312_v19 = vpack.c.bf16 %v1549_v18, %v1548_v15 }
 0x274   :  { %2248 = vmatpush1.bf16.msra.mxu0 %v2247_v22  ;;  %v2315_v22 = vpack.c.bf16 %v1551_v21, %v1550_v20 }
 0x275   :  { %2250 = vmatprep.subr.bf16.mxu0 %v2249_v23 }
 0x278   :  { %2252 = vmatpush1.bf16.msra.mxu0 %v2251_v28 }
 0x279   :  { %2254 = vmatprep.subr.bf16.mxu0 %v2253_v30 }
 0x27c   :  { %2256 = vmatpush1.bf16.msra.mxu0 %v2255_v35 }
 0x27d   :  { %2258 = vmatprep.subr.bf16.mxu0 %v2257_v37 }
 0x280   :  { %2260 = vmatpush1.bf16.msra.mxu0 %v2259_v40 }
 0x283   :  { %1418 = vmatmul.mubr.f32.vlgmr.msra.gmra.mrb[2].mxu0 %v1140_v42 }
 0x356   :  { %v1419_v58 = vpop.f32.mrb[2].mxu0 }
 0x357   :  { %v2323_v59 = vadd.f32 %v1419_v58, %v1275_v14  ;;  %v1421_v60 = vpop.f32.mrb[3].mxu0 }
 0x358   :  { %v2324_v63 = vadd.f32 %v1421_v60, %v1279_v57 }
 0x359   :  { %v1424_v3 = vmax.f32 %v2323_v59, 0.0 }
 0x35a   :  { %v1425_v1 = vmax.f32 %v2324_v63, 0.0 }
 0x35c   :  { %1529 = vmatprep.mubr.f32.mxu1 %v1425_v1 }
 0x35d   :  { %1530 = vmatmul.mubr.f32.vlgmr.msra.gmra.mrb[4].mxu1 %v1424_v3 }
 0x35e   :  { %2295 = vmatpush3.bf16.msra.mxu1 %v2294_v2  ;;  %1738 = vmatprep.mubr.msk.f32.mxu1 %vm2606_vm1, %v2604_v0 }
 0x35f   :  { %2296 = vmatprep.subr.bf16.mxu1 %v2605_v55 }
 0x362   :  { %2298 = vmatpush3.bf16.msra.mxu1 %v2297_v6 }
 0x363   :  { %2299 = vmatprep.subr.bf16.mxu1 %v2605_v55 }
 0x366   :  { %2301 = vmatpush3.bf16.msra.mxu1 %v2300_v47 }
 0x367   :  { %2302 = vmatprep.subr.bf16.mxu1 %v2605_v55 }
 0x36a   :  { %2304 = vmatpush3.bf16.msra.mxu1 %v2303_v16 }
 0x36b   :  { %2305 = vmatprep.subr.bf16.mxu1 %v2605_v55 }
 0x36e   :  { %2307 = vmatpush3.bf16.msra.mxu1 %v2306_v10 }
 0x36f   :  { %2308 = vmatprep.subr.bf16.mxu1 %v2605_v55 }
 0x372   :  { %2310 = vmatpush3.bf16.msra.mxu1 %v2309_v13 }
 0x373   :  { %2311 = vmatprep.subr.bf16.mxu1 %v2605_v55 }
 0x376   :  { %2313 = vmatpush3.bf16.msra.mxu1 %v2312_v19 }
 0x377   :  { %2314 = vmatprep.subr.bf16.mxu1 %v2605_v55 }
 0x37a   :  { %2316 = vmatpush3.bf16.msra.mxu1 %v2315_v22 }
 0x430   :  { %v1686_v23 = vpop.f32.mrb[4].mxu1 }
 0x431   :  { %v1687_v25 = vpop.f32.mrb[5].mxu1 }
 0x432   :  { %v1688_v26 = vadd.f32 %v1687_v25, %v1686_v23 }
 0x434   :  { %v1532_v27 = vadd.f32 %v1688_v26, %v1652_v24 }
 0x436   :  { %v1535_v28 = vmax.f32 %v1532_v27, 0.0 }
 0x438   :  { %1739 = vmatmul.mubr.f32.vlgmr.msra.gmra.mrb[6].mxu1 %v1535_v28 }
 0x50b   :  { %v1625_v30 = vpop.f32.mrb[6].mxu1 }
 0x50c   :  { %v1626_v31 = vadd.f32 %v1653_v29, %v1625_v30  ;;  %v1740_v32 = vpop.f32.mrb[7].mxu1 }
 0x50e   :  { %v1629_v33 = vmax.f32 %v1626_v31, 0.0 }
 0x510   :  { %1630 = vst [vmem:[#allocation17] sm:$0xff] %v1629_v33 }
 0x511   :  { %2566 = shalt.err (!%p2563_p6)
}
 0x512   :  { %s2567_s7 = scalar_lea.hbm %s2821_s9, 128 }
 0x513   :  { %p2568_p7 = scmp.ne.s32.totalorder %s2821_s9, %s2567_s7  ;;  %p2571_p8 = scmp.lt.u32.totalorder %s2567_s7, %s2821_s9 }
 0x515   :  { %p2573_p9 = pnand %p2571_p8, %p2568_p7 }
 0x517   :  { %2576 = shalt.err (!%p2573_p9)
}
 0x518   :  { %1640 = dma.vmem_to_hbm [thread:$0]  %s1638_s25, 128, %s2821_s9, [#allocation4]  }
 0x519   :  { %2587 = dma.done.wait [#allocation4], 128  }
 0x51a   :  { %2588 = vsyncadd [#allocation4], 4294967168 }
 0x51b   :  { %1644 = vsyncpa [#allocation3], 1 }
 0x51c   :  { %1645 = vsyncpa [#allocation6], 1 }
 0x51d   :  { %1646 = vsyncpa [#allocation9], 1 }
 0x51e   :  { %1647 = vsyncpa [#allocation12], 1 }
 0x51f   :  { %1648 = vsyncpa [#allocation15], 1 }
 0x520   :  { %1649 = vsyncpa [#allocation4], 1 }

</bundles_post_ra>
